<compile_context>
chip_gen: v5e
topology: v5e:2x2
jax: 0.10.0
libtpu: 0.0.40
codegen_flags: <defaults>
</compile_context>

<pallas_src>
import functools
import math

import jax
import jax.numpy as jnp
from jax.experimental import pallas as pl
from jax.experimental.pallas import tpu as pltpu

_LANE = 128            # TPU lane width: keep kernel outputs lane-dense
_TILE_M_TARGET = 512   # rows per grid step
_TILE_K_MAX = 2048     # contraction block cap (VMEM budget, v7x/v5e friendly)


def autopad(k, p=None):
    if p is None:
        p = k // 2 if isinstance(k, int) else [x // 2 for x in k]
    return p


def _round_up(a, b):
    return (a + b - 1) // b * b


def _apply_act(y, act):
    if act == "silu":
        return y * jax.nn.sigmoid(y)
    return y


def _vmem_limit(need_bytes):
    """Scoped-VMEM request: computed bytes + headroom, floored at 32MiB, capped
    below v7x's 64MiB physical VMEM."""
    return max(32 << 20, min(int(need_bytes * 1.4) + (4 << 20), 48 << 20))


# ----------------------------- Pallas kernels ------------------------------

def _matmul_bn_act_kernel(x_ref, w_ref, s_ref, b_ref, o_ref, acc_ref, *, act):
    """acc += x @ w over the K grid axis; BN affine + act fused on the last step.

    Used for 1x1 convs (K = Cin) and for the im2col paths (K = k*k*Cin).
    Matmul runs in bf16 on the MXU with an f32 VMEM accumulator; BN + SiLU stay
    in f32; the stored output is bf16 (lane-dense, Cout padded to 128).
    """
    kk = pl.program_id(2)

    @pl.when(kk == 0)
    def _():
        acc_ref[...] = jnp.zeros_like(acc_ref)

    acc_ref[...] += jnp.dot(x_ref[...].astype(jnp.bfloat16), w_ref[...],
                            preferred_element_type=jnp.float32)

    @pl.when(kk == pl.num_programs(2) - 1)
    def _():
        y = acc_ref[...] * s_ref[...] + b_ref[...]
        o_ref[...] = _apply_act(y, act).astype(o_ref.dtype)


def _conv_s1_halo_kernel(x_hbm, w_ref, s_ref, b_ref, o_ref, xbuf, sem,
                         *, k, th, wo, cin, act, accumulate):
    """k x k stride-1 conv + BN + act for one (batch n, output-row tile) block.

    The padded bf16 NHWC input stays in HBM; the kernel double-buffers the
    (th + k - 1)-row halo slab DMA across row tiles (prefetch ih+1 while
    computing ih).  For Cin >= 128 the k*k taps are consumed as accumulated
    matmuls (no lane-dim concatenate); for small Cin a single long-K matmul is
    used.
    """
    n = pl.program_id(0)
    ih = pl.program_id(1)
    nh = pl.num_programs(1)
    th_in = th + k - 1
    slot = ih % 2

    def _start_fetch(row_tile, slot_idx):
        pltpu.make_async_copy(
            x_hbm.at[n, pl.ds(row_tile * th, th_in)],
            xbuf.at[slot_idx], sem.at[slot_idx]).start()

    @pl.when(ih == 0)                       # prime the pipeline for this image
    def _():
        _start_fetch(0, 0)

    @pl.when(ih + 1 < nh)                   # prefetch next row tile (other slot)
    def _():
        _start_fetch(ih + 1, 1 - slot)

    # Wait for the slab of the current row tile (src arg only sets shape/sem).
    pltpu.make_async_copy(
        x_hbm.at[n, pl.ds(0, th_in)], xbuf.at[slot], sem.at[slot]).wait()

    xh = xbuf[slot]                         # (th_in, wp_cols, cin), bf16

    def tap(dh, dw):
        return xh[dh:dh + th, dw:dw + wo, :].reshape(th * wo, cin)

    if accumulate:
        # k*k accumulated matmuls: skips the lane-dim concat / extra VMEM copies.
        y = None
        for t in range(k * k):
            dh, dw = divmod(t, k)
            part = jnp.dot(tap(dh, dw), w_ref[t * cin:(t + 1) * cin, :],
                           preferred_element_type=jnp.float32)
            y = part if y is None else y + part
    else:
        xt = jnp.concatenate(
            [tap(dh, dw) for dh in range(k) for dw in range(k)], axis=-1)
        y = jnp.dot(xt, w_ref[...], preferred_element_type=jnp.float32)

    y = y * s_ref[...] + b_ref[...]
    y = _apply_act(y, act)
    o_ref[...] = y.reshape(o_ref.shape).astype(o_ref.dtype)


# ------------------------------ wrappers ------------------------------------

def _pad_cout(w2d, scale, bias):
    """Zero-pad Cout to a multiple of 128 (lane-dense stores) and cast weights
    to bf16.  Done ONCE at init, not per forward call."""
    cout = w2d.shape[-1]
    coutp = _round_up(cout, _LANE)
    pad = coutp - cout
    wp = jnp.pad(w2d, ((0, 0), (0, pad))).astype(jnp.bfloat16)
    sp = jnp.pad(scale.reshape(1, -1), ((0, 0), (0, pad))).astype(jnp.float32)
    bp = jnp.pad(bias.reshape(1, -1), ((0, 0), (0, pad))).astype(jnp.float32)
    return wp, sp, bp, coutp


def _pick_tile_k(K):
    if K <= _TILE_K_MAX:
        return K
    for d in range(_TILE_K_MAX, 0, -_LANE):     # multiples of 128 only
        if K % d == 0:
            return d
    return K


def _pick_tile_n(coutp, grid_m):
    if coutp <= 256:
        if grid_m == 1 and coutp == 256:
            return 128                          # >=2 grid steps for v7x megacore
        return coutp
    if coutp % 256 == 0:
        return 256                              # v6e/v7x 256-wide MXU alignment
    return 128


def _matmul_bn_act(x2d, wp, sp, bp, coutp, act):
    """y = act((x2d @ wp) * scale + bias) -> (M, coutp) bf16."""
    M, K = x2d.shape
    tm = min(_TILE_M_TARGET, _round_up(M, 8))
    grid_m = pl.cdiv(M, tm)                     # ragged last tile handled by Pallas
    tk = _pick_tile_k(K)
    grid_k = K // tk
    tn = _pick_tile_n(coutp, grid_m)
    grid_n = coutp // tn

    need = (2 * tm * tk * x2d.dtype.itemsize    # x blocks (double-buffered)
            + 2 * tk * tn * 2                   # w blocks (bf16)
            + 2 * tm * tn * 2                   # out blocks (bf16)
            + tm * tn * 4                       # f32 accumulator scratch
            + 4 * 2 * tn * 4)                   # scale / bias blocks

    # TODO(synk): sweep pipeline_mode=pl.Buffered(3) on the x spec for small coutp.
    out = pl.pallas_call(
        functools.partial(_matmul_bn_act_kernel, act=act),
        out_shape=jax.ShapeDtypeStruct((M, coutp), jnp.bfloat16),
        grid=(grid_m, grid_n, grid_k),
        in_specs=[
            pl.BlockSpec((tm, tk), lambda i, j, kk: (i, kk)),
            pl.BlockSpec((tk, tn), lambda i, j, kk: (kk, j)),
            pl.BlockSpec((1, tn), lambda i, j, kk: (0, j)),
            pl.BlockSpec((1, tn), lambda i, j, kk: (0, j)),
        ],
        out_specs=pl.BlockSpec((tm, tn), lambda i, j, kk: (i, j)),
        scratch_shapes=[pltpu.VMEM((tm, tn), jnp.float32)],
        compiler_params=pltpu.CompilerParams(
            dimension_semantics=("parallel", "parallel", "arbitrary"),
            vmem_limit_bytes=_vmem_limit(need)),
    )(x2d, wp, sp, bp)
    return out


def _conv_s1_halo(x_nhwc, wp, sp, bp, *, k, cin, coutp, pad, act):
    N, H, W, _ = x_nhwc.shape
    ho = H + 2 * pad - k + 1
    wo = W + 2 * pad - k + 1
    # The pad is already a full copy; fuse the bf16 cast into it.
    xp = jnp.pad(x_nhwc.astype(jnp.bfloat16),
                 ((0, 0), (pad, pad), (pad, pad), (0, 0)))
    wp_cols = W + 2 * pad

    # Output-row tile: largest divisor of ho with th*wo near the row-tile target.
    max_th = max(1, _TILE_M_TARGET // max(wo, 1))
    th = 1
    for d in range(1, ho + 1):
        if ho % d == 0 and d <= max_th:
            th = d
    th_in = th + k - 1
    accumulate = cin >= _LANE
    kfull = k * k * cin

    need = (2 * kfull * coutp * 2               # weights (bf16, double-buffered)
            + 2 * th * wo * coutp * 2           # out blocks (bf16)
            + 2 * th_in * wp_cols * cin * 2     # halo double buffer (bf16)
            + th_in * wp_cols * cin * 2         # xh load temp
            + (0 if accumulate else th * wo * kfull * 2)  # tap concat temp
            + th * wo * coutp * 4               # f32 matmul / epilogue temp
            + 4 * coutp * 4)                    # scale / bias

    out = pl.pallas_call(
        functools.partial(_conv_s1_halo_kernel, k=k, th=th, wo=wo, cin=cin,
                          act=act, accumulate=accumulate),
        out_shape=jax.ShapeDtypeStruct((N, ho, wo, coutp), jnp.bfloat16),
        grid=(N, ho // th),
        in_specs=[
            pl.BlockSpec(memory_space=pl.ANY),              # padded input in HBM
            pl.BlockSpec((kfull, coutp), lambda n, i: (0, 0)),
            pl.BlockSpec((1, coutp), lambda n, i: (0, 0)),
            pl.BlockSpec((1, coutp), lambda n, i: (0, 0)),
        ],
        out_specs=pl.BlockSpec((None, th, wo, coutp), lambda n, i: (n, i, 0, 0)),
        scratch_shapes=[
            pltpu.VMEM((2, th_in, wp_cols, cin), jnp.bfloat16),
            pltpu.SemaphoreType.DMA((2,)),
        ],
        compiler_params=pltpu.CompilerParams(
            # ih carries the prefetch state across steps -> "arbitrary".
            dimension_semantics=("parallel", "arbitrary"),
            vmem_limit_bytes=_vmem_limit(need)),
    )(xp, wp, sp, bp)
    return out


def _im2col(x_nhwc, k, s, pad):
    """One-shot im2col (JAX glue, bf16) -> (N*Ho*Wo, k*k*Cin)."""
    N, H, W, C = x_nhwc.shape
    xp = jnp.pad(x_nhwc, ((0, 0), (pad, pad), (pad, pad), (0, 0)))
    ho = (H + 2 * pad - k) // s + 1
    wo = (W + 2 * pad - k) // s + 1
    cols = [xp[:, dh:dh + (ho - 1) * s + 1:s, dw:dw + (wo - 1) * s + 1:s, :]
            for dh in range(k) for dw in range(k)]
    cols = jnp.concatenate(cols, axis=-1).reshape(N * ho * wo, k * k * C)
    return cols, ho, wo


def conv2d_bn_act_nhwc(x_nhwc, prm):
    """Fused conv+BN+act on NHWC input; returns NHWC bf16 (keep NHWC/bf16 when
    stacking layers to avoid per-layer transposes / f32 round-trips)."""
    k, s, pad, act = prm["k"], prm["s"], prm["p"], prm["act"]
    cin, cout, coutp = prm["cin"], prm["cout"], prm["coutp"]
    wp, sp, bp = prm["w2d"], prm["scale_p"], prm["bias_p"]
    N, H, W, _ = x_nhwc.shape

    if k == 1 and s == 1 and pad == 0:
        out2d = _matmul_bn_act(x_nhwc.reshape(N * H * W, cin), wp, sp, bp,
                               coutp, act)
        out = out2d.reshape(N, H, W, coutp)
    elif s == 1 and cin * k * k >= _LANE:
        out = _conv_s1_halo(x_nhwc, wp, sp, bp, k=k, cin=cin, coutp=coutp,
                            pad=pad, act=act)
    else:
        # Strided conv or very-low-Cin (lane-sparse) layer: bf16 im2col + matmul.
        # TODO(synk): strided halo-DMA kernel to avoid the HBM im2col on s=2 layers.
        cols, ho, wo = _im2col(x_nhwc.astype(jnp.bfloat16), k, s, pad)
        out2d = _matmul_bn_act(cols, wp, sp, bp, coutp, act)
        out = out2d.reshape(N, ho, wo, coutp)

    if coutp != cout:
        out = out[..., :cout]
    return out


# ------------------------------ module --------------------------------------

def init_conv_params(key, c1, c2, k=1, s=1, p=None, g=1, act=True):
    """Parameters for Conv(c1, c2, k, s, p, g, act) with eval-mode BN folded.
    Kernel-ready (padded, bf16) weights are precomputed here, once."""
    assert g == 1  # TODO(synk): grouped conv (g > 1) not implemented
    kw, kg, kb, km, kv = jax.random.split(key, 5)
    w = jax.random.normal(kw, (k, k, c1, c2), jnp.float32) / math.sqrt(k * k * c1)
    gamma = 1.0 + 0.1 * jax.random.normal(kg, (c2,), jnp.float32)
    beta = 0.1 * jax.random.normal(kb, (c2,), jnp.float32)
    mean = 0.1 * jax.random.normal(km, (c2,), jnp.float32)
    var = jnp.abs(jax.random.normal(kv, (c2,), jnp.float32)) + 0.5
    scale = gamma / jnp.sqrt(var + 1e-5)
    bias = beta - mean * scale

    w2d = w.reshape(k * k * c1, c2)
    wp, sp, bp, coutp = _pad_cout(w2d, scale, bias)
    return dict(w2d=wp, scale_p=sp, bias_p=bp, cin=c1, cout=c2, coutp=coutp,
                k=k, s=s, p=autopad(k, p),
                act="silu" if act is True else "none",
                # raw params kept for the reference implementation
                w_hwio=w, scale_raw=scale, bias_raw=bias)


def conv_forward(x_nchw, prm):
    """Conv.forward: act(bn(conv(x))).  NCHW in (PyTorch convention), NCHW bf16 out.
    For stacked layers prefer conv2d_bn_act_nhwc directly (no transposes)."""
    x = jnp.transpose(x_nchw, (0, 2, 3, 1))        # -> NHWC (channels-last)
    y = conv2d_bn_act_nhwc(x, prm)
    return jnp.transpose(y, (0, 3, 1, 2))          # -> NCHW


# ------------------------------ reference -----------------------------------

def ref_conv_forward(x_nchw, prm):
    x = jnp.transpose(x_nchw, (0, 2, 3, 1))
    s, p = prm["s"], prm["p"]
    y = jax.lax.conv_general_dilated(
        x, prm["w_hwio"], (s, s), ((p, p), (p, p)),
        dimension_numbers=("NHWC", "HWIO", "NHWC"),
        precision=jax.lax.Precision.HIGHEST)
    y = y * prm["scale_raw"].reshape(1, 1, 1, -1) + prm["bias_raw"].reshape(1, 1, 1, -1)
    if prm["act"] == "silu":
        y = y * jax.nn.sigmoid(y)
    return jnp.transpose(y, (0, 3, 1, 2))


# --------------------------------- main --------------------------------------

if __name__ == "__main__":
    key = jax.random.PRNGKey(0)
    cases = [
        dict(c1=4,   c2=8,   k=1, s=1, hw=16),   # 1x1 fused-matmul path
        dict(c1=4,   c2=8,   k=3, s=1, hw=16),   # low-Cin -> im2col matmul path
        dict(c1=32,  c2=64,  k=3, s=1, hw=32),   # halo kernel, single long-K matmul
        dict(c1=128, c2=128, k=3, s=1, hw=32),   # halo kernel, accumulated matmuls
        dict(c1=4,   c2=8,   k=3, s=2, hw=16),   # strided conv -> im2col fallback
    ]
    for idx, cfg in enumerate(cases):
        kx, kp = jax.random.split(jax.random.fold_in(key, idx))
        x = jax.random.normal(kx, (2, cfg["c1"], cfg["hw"], cfg["hw"]), jnp.float32)
        prm = init_conv_params(kp, cfg["c1"], cfg["c2"], k=cfg["k"], s=cfg["s"])
        fwd = jax.jit(lambda xx, prm=prm: conv_forward(xx, prm))
        out = jax.block_until_ready(fwd(x)).astype(jnp.float32)
        ref = jax.block_until_ready(ref_conv_forward(x, prm))
        assert out.shape == ref.shape, (cfg, out.shape, ref.shape)
        # bf16 inputs/weights/outputs (f32 accumulation + f32 BN/SiLU epilogue).
        if not jnp.allclose(out, ref, atol=1e-1, rtol=5e-2):
            err = float(jnp.max(jnp.abs(out - ref)))
            raise AssertionError(f"Pallas output mismatch for {cfg}: max|err|={err}")

    print("KERNEL_OK")
</pallas_src>

<mosaic_0001>
module attributes {stable_mosaic.version = 11 : i64} {
  func.func @_matmul_bn_act_kernel(%arg0: i32, %arg1: i32, %arg2: i32, %arg3: memref<512x4xf32, #tpu.memory_space<vmem>>, %arg4: memref<4x128xbf16, #tpu.memory_space<vmem>>, %arg5: memref<1x128xf32, #tpu.memory_space<vmem>>, %arg6: memref<1x128xf32, #tpu.memory_space<vmem>>, %arg7: memref<512x128xbf16, #tpu.memory_space<vmem>>, %arg8: memref<512x128xf32, #tpu.memory_space<vmem>>) attributes {dimension_semantics = [#tpu.dimension_semantics<parallel>, #tpu.dimension_semantics<parallel>, #tpu.dimension_semantics<arbitrary>], iteration_bounds = array<i64: 1, 1, 1>, scalar_prefetch = 0 : i64, scratch_operands = 1 : i64, tpu.core_type = #tpu.core_type<tc>, window_params = [{transform_indices = @transform_0, window_bounds = array<i64: 512, 4>}, {transform_indices = @transform_1, window_bounds = array<i64: 4, 128>}, {transform_indices = @transform_2, window_bounds = array<i64: 1, 128>}, {transform_indices = @transform_3, window_bounds = array<i64: 1, 128>}, {transform_indices = @transform_4, window_bounds = array<i64: 512, 128>}]} {
    %c0_i32 = arith.constant 0 : i32
    %0 = arith.cmpi eq, %arg2, %c0_i32 : i32
    %1 = arith.extui %0 : i1 to i32
    %c0_i32_0 = arith.constant 0 : i32
    %2 = arith.cmpi ne, %1, %c0_i32_0 : i32
    scf.if %2 {
      %cst_10 = arith.constant 0.000000e+00 : f32
      %13 = vector.broadcast %cst_10 : f32 to vector<512x128xf32>
      %c0_11 = arith.constant 0 : index
      %c0_12 = arith.constant 0 : index
      %14 = vector.load %arg8[%c0_11, %c0_12] : memref<512x128xf32, #tpu.memory_space<vmem>>, vector<512x128xf32>
      tpu.vector_store %arg8[%c0_11, %c0_12], %13 {strides = array<i32>} : memref<512x128xf32, #tpu.memory_space<vmem>>, vector<512x128xf32>,
    } else {
    }
    %c0 = arith.constant 0 : index
    %c0_1 = arith.constant 0 : index
    %3 = vector.load %arg8[%c0, %c0_1] : memref<512x128xf32, #tpu.memory_space<vmem>>, vector<512x128xf32>
    %c0_2 = arith.constant 0 : index
    %c0_3 = arith.constant 0 : index
    %4 = vector.load %arg3[%c0_2, %c0_3] : memref<512x4xf32, #tpu.memory_space<vmem>>, vector<512x4xf32>
    %5 = arith.truncf %4 : vector<512x4xf32> to vector<512x4xbf16>
    %c0_4 = arith.constant 0 : index
    %c0_5 = arith.constant 0 : index
    %6 = vector.load %arg4[%c0_4, %c0_5] : memref<4x128xbf16, #tpu.memory_space<vmem>>, vector<4x128xbf16>
    %cst = arith.constant dense<0.000000e+00> : vector<512x128xf32>
    %7 = tpu.matmul %5, %6, %cst {dimension_numbers = #tpu.dot_dimension_numbers<[1], [0], [0], [1], [0, 0, 1, 1], [], []>} : vector<512x4xbf16>, vector<4x128xbf16>, vector<512x128xf32> -> vector<512x128xf32>
    %8 = arith.addf %3, %7 : vector<512x128xf32>
    %c0_6 = arith.constant 0 : index
    %c0_7 = arith.constant 0 : index
    %9 = vector.load %arg8[%c0_6, %c0_7] : memref<512x128xf32, #tpu.memory_space<vmem>>, vector<512x128xf32>
    tpu.vector_store %arg8[%c0_6, %c0_7], %8 {strides = array<i32>} : memref<512x128xf32, #tpu.memory_space<vmem>>, vector<512x128xf32>,
    %c0_i32_8 = arith.constant 0 : i32
    %10 = arith.cmpi eq, %arg2, %c0_i32_8 : i32
    %11 = arith.extui %10 : i1 to i32
    %c0_i32_9 = arith.constant 0 : i32
    %12 = arith.cmpi ne, %11, %c0_i32_9 : i32
    scf.if %12 {
      %c0_10 = arith.constant 0 : index
      %c0_11 = arith.constant 0 : index
      %13 = vector.load %arg8[%c0_10, %c0_11] : memref<512x128xf32, #tpu.memory_space<vmem>>, vector<512x128xf32>
      %c0_12 = arith.constant 0 : index
      %c0_13 = arith.constant 0 : index
      %14 = vector.load %arg5[%c0_12, %c0_13] : memref<1x128xf32, #tpu.memory_space<vmem>>, vector<1x128xf32>
      %15 = vector.broadcast %14 : vector<1x128xf32> to vector<512x128xf32>
      %16 = arith.mulf %13, %15 : vector<512x128xf32>
      %c0_14 = arith.constant 0 : index
      %c0_15 = arith.constant 0 : index
      %17 = vector.load %arg6[%c0_14, %c0_15] : memref<1x128xf32, #tpu.memory_space<vmem>>, vector<1x128xf32>
      %18 = vector.broadcast %17 : vector<1x128xf32> to vector<512x128xf32>
      %19 = arith.addf %16, %18 : vector<512x128xf32>
      %20 = arith.negf %19 : vector<512x128xf32>
      %21 = math.exp %20 : vector<512x128xf32>
      %cst_16 = arith.constant 1.000000e+00 : f32
      %22 = vector.broadcast %cst_16 : f32 to vector<512x128xf32>
      %23 = arith.addf %22, %21 : vector<512x128xf32>
      %24 = arith.divf %22, %23 : vector<512x128xf32>
      %25 = arith.mulf %19, %24 : vector<512x128xf32>
      %26 = arith.truncf %25 : vector<512x128xf32> to vector<512x128xbf16>
      %c0_17 = arith.constant 0 : index
      %c0_18 = arith.constant 0 : index
      %27 = vector.load %arg7[%c0_17, %c0_18] : memref<512x128xbf16, #tpu.memory_space<vmem>>, vector<512x128xbf16>
      tpu.vector_store %arg7[%c0_17, %c0_18], %26 {strides = array<i32>} : memref<512x128xbf16, #tpu.memory_space<vmem>>, vector<512x128xbf16>,
    } else {
    }
    return
  }
  func.func @transform_0(%arg0: i32, %arg1: i32, %arg2: i32) -> (i32, i32) {
    %c0_i32 = arith.constant 0 : i32
    return %arg0, %arg2 : i32, i32
  }
  func.func @transform_1(%arg0: i32, %arg1: i32, %arg2: i32) -> (i32, i32) {
    %c0_i32 = arith.constant 0 : i32
    return %arg2, %arg1 : i32, i32
  }
  func.func @transform_2(%arg0: i32, %arg1: i32, %arg2: i32) -> (i32, i32) {
    %c0_i32 = arith.constant 0 : i32
    %c0_i32_0 = arith.constant 0 : i32
    return %c0_i32, %arg1 : i32, i32
  }
  func.func @transform_3(%arg0: i32, %arg1: i32, %arg2: i32) -> (i32, i32) {
    %c0_i32 = arith.constant 0 : i32
    %c0_i32_0 = arith.constant 0 : i32
    return %c0_i32, %arg1 : i32, i32
  }
  func.func @transform_4(%arg0: i32, %arg1: i32, %arg2: i32) -> (i32, i32) {
    %c0_i32 = arith.constant 0 : i32
    return %arg0, %arg1 : i32, i32
  }
}

</mosaic_0001>

<bundles_post_ra>
// kernel: _lambda_.1
= control target key start
LH: loop header
LB: loop body
LE: loop exit
PB: predicated region body
PF: predicated region fallthrough
CT: control target
= control target key end

     0   :  { %vm344_vm0 = vcmask 1041408   ;;  %vm247_vm1 = vcmask 31744   ;;  %s4950_s1 = inlined_call_operand.vmem [shape: bf16[4,128], index: 1, kind: input, shape index: {}]   ;;  %s4951_s0 = inlined_call_operand.vmem [shape: f32[512,4], index: 0, kind: input, shape index: {}]   ;;  %s4952_s2 = inlined_call_operand.vmem [shape: f32[1,128], index: 2, kind: input, shape index: {}]   ;;  %s4953_s3 = inlined_call_operand.vmem [shape: f32[1,128], index: 3, kind: input, shape index: {}]   ;;  %s4954_s4 = inlined_call_operand.vmem [shape: bf16[512,128], index: 4, kind: output, shape index: {}]  }
   0x1   :  { %v246_v0 = vld [vmem:[%s4950_s1] sm:$0x3]  ;;  %v151_v2 = vld [vmem:[%s4951_s0 + $0x8] sm:$0xff]  ;;  %v152_v14 = vld [vmem:[%s4951_s0 + $0x10] sm:$0xff] }
   0x2   :  { %v150_v1 = vld [vmem:[%s4951_s0] sm:$0xff]  ;;  %v346_v3 = vsel %vm344_vm0, %v246_v0, 0  ;;  %v167_v6 = vld [vmem:[%s4951_s0 + $0x88] sm:$0xff]  ;;  %v153_v15 = vld [vmem:[%s4951_s0 + $0x18] sm:$0xff] }
   0x3   :  { %v214_v4 = vpack.c.bf16 %v151_v2, %v150_v1  ;;  %v166_v5 = vld [vmem:[%s4951_s0 + $0x80] sm:$0xff]  ;;  %355 = vmatpush.bf16.msra.mxu0 %v346_v3  ;;  %2547 = vmatpush.bf16.msra.mxu1 %v346_v3  ;;  %v183_v9 = vld [vmem:[%s4951_s0 + $0x108] sm:$0xff]  ;;  %v168_v16 = vld [vmem:[%s4951_s0 + $0x90] sm:$0xff]  ;;  %v215_v22 = vpack.c.bf16 %v153_v15, %v152_v14 }
   0x4   :  { %v182_v7 = vld [vmem:[%s4951_s0 + $0x100] sm:$0xff]  ;;  %v222_v8 = vpack.c.bf16 %v167_v6, %v166_v5  ;;  %v199_v11 = vld [vmem:[%s4951_s0 + $0x188] sm:$0xff]  ;;  %2548 = vmatpush.bf16.msra.mxu2 %v346_v3  ;;  %2549 = vmatpush.bf16.msra.mxu3 %v346_v3  ;;  %v169_v17 = vld [vmem:[%s4951_s0 + $0x98] sm:$0xff] }
   0x5   :  { %v198_v10 = vld [vmem:[%s4951_s0 + $0x180] sm:$0xff]  ;;  %v230_v12 = vpack.c.bf16 %v183_v9, %v182_v7  ;;  %v184_v18 = vld [vmem:[%s4951_s0 + $0x110] sm:$0xff]  ;;  %v185_v19 = vld [vmem:[%s4951_s0 + $0x118] sm:$0xff]  ;;  %v223_v23 = vpack.c.bf16 %v169_v17, %v168_v16 }
   0x6   :  { %v238_v13 = vpack.c.bf16 %v199_v11, %v198_v10  ;;  %2260 = vmatmul.msk.bf16.vlgmr.msra.gmra.mxu0 %vm247_vm1, %v214_v4  ;;  %2268 = vmatmul.msk.bf16.vlgmr.msra.gmra.mxu1 %vm247_vm1, %v222_v8  ;;  %v200_v20 = vld [vmem:[%s4951_s0 + $0x190] sm:$0xff]  ;;  %v201_v21 = vld [vmem:[%s4951_s0 + $0x198] sm:$0xff]  ;;  %v231_v24 = vpack.c.bf16 %v185_v19, %v184_v18  ;;  %v154_v26 = vld [vmem:[%s4951_s0 + $0x20] sm:$0xff] }
   0x7   :  { %2276 = vmatmul.msk.bf16.vlgmr.msra.gmra.mxu2 %vm247_vm1, %v230_v12  ;;  %v239_v25 = vpack.c.bf16 %v201_v21, %v200_v20  ;;  %v155_v27 = vld [vmem:[%s4951_s0 + $0x28] sm:$0xff]  ;;  %v170_v28 = vld [vmem:[%s4951_s0 + $0xa0] sm:$0xff]  ;;  %v156_v38 = vld [vmem:[%s4951_s0 + $0x30] sm:$0xff] }
   0x8   :  { %2284 = vmatmul.msk.bf16.vlgmr.msra.gmra.mxu3 %vm247_vm1, %v238_v13  ;;  %v171_v29 = vld [vmem:[%s4951_s0 + $0xa8] sm:$0xff]  ;;  %v186_v30 = vld [vmem:[%s4951_s0 + $0x120] sm:$0xff]  ;;  %v216_v34 = vpack.c.bf16 %v155_v27, %v154_v26  ;;  %v157_v39 = vld [vmem:[%s4951_s0 + $0x38] sm:$0xff] }
   0x9   :  { %v187_v31 = vld [vmem:[%s4951_s0 + $0x128] sm:$0xff]  ;;  %v202_v32 = vld [vmem:[%s4951_s0 + $0x1a0] sm:$0xff]  ;;  %v224_v35 = vpack.c.bf16 %v171_v29, %v170_v28  ;;  %v172_v40 = vld [vmem:[%s4951_s0 + $0xb0] sm:$0xff]  ;;  %v217_v46 = vpack.c.bf16 %v157_v39, %v156_v38 }
   0xa   :  { %v203_v33 = vld [vmem:[%s4951_s0 + $0x1a8] sm:$0xff]  ;;  %v232_v36 = vpack.c.bf16 %v187_v31, %v186_v30  ;;  %v173_v41 = vld [vmem:[%s4951_s0 + $0xb8] sm:$0xff]  ;;  %v188_v42 = vld [vmem:[%s4951_s0 + $0x130] sm:$0xff] }
   0xb   :  { %v240_v37 = vpack.c.bf16 %v203_v33, %v202_v32  ;;  %v189_v43 = vld [vmem:[%s4951_s0 + $0x138] sm:$0xff]  ;;  %v204_v44 = vld [vmem:[%s4951_s0 + $0x1b0] sm:$0xff]  ;;  %v225_v47 = vpack.c.bf16 %v173_v41, %v172_v40  ;;  %v158_v50 = vld [vmem:[%s4951_s0 + $0x40] sm:$0xff] }
   0xc   :  { %v205_v45 = vld [vmem:[%s4951_s0 + $0x1b8] sm:$0xff]  ;;  %v233_v48 = vpack.c.bf16 %v189_v43, %v188_v42  ;;  %v159_v51 = vld [vmem:[%s4951_s0 + $0x48] sm:$0xff]  ;;  %v174_v52 = vld [vmem:[%s4951_s0 + $0xc0] sm:$0xff] }
   0xd   :  { %v241_v49 = vpack.c.bf16 %v205_v45, %v204_v44  ;;  %v175_v53 = vld [vmem:[%s4951_s0 + $0xc8] sm:$0xff]  ;;  %v190_v54 = vld [vmem:[%s4951_s0 + $0x140] sm:$0xff]  ;;  %v218_v58 = vpack.c.bf16 %v159_v51, %v158_v50  ;;  %v160_v62 = vld [vmem:[%s4951_s0 + $0x50] sm:$0xff] }
   0xe   :  { %v191_v55 = vld [vmem:[%s4951_s0 + $0x148] sm:$0xff]  ;;  %v206_v56 = vld [vmem:[%s4951_s0 + $0x1c0] sm:$0xff]  ;;  %v226_v59 = vpack.c.bf16 %v175_v53, %v174_v52  ;;  %v161_v63 = vld [vmem:[%s4951_s0 + $0x58] sm:$0xff] }
   0xf   :  { %v207_v57 = vld [vmem:[%s4951_s0 + $0x1c8] sm:$0xff]  ;;  %v234_v60 = vpack.c.bf16 %v191_v55, %v190_v54  ;;  %v176_v0 = vld [vmem:[%s4951_s0 + $0xd0] sm:$0xff]  ;;  %v177_v1 = vld [vmem:[%s4951_s0 + $0xd8] sm:$0xff]  ;;  %v219_v6 = vpack.c.bf16 %v161_v63, %v160_v62 }
  0x10   :  { %v242_v61 = vpack.c.bf16 %v207_v57, %v206_v56  ;;  %v192_v2 = vld [vmem:[%s4951_s0 + $0x150] sm:$0xff]  ;;  %v193_v3 = vld [vmem:[%s4951_s0 + $0x158] sm:$0xff]  ;;  %v227_v7 = vpack.c.bf16 %v177_v1, %v176_v0  ;;  %v162_v10 = vld [vmem:[%s4951_s0 + $0x60] sm:$0xff] }
  0x11   :  { %v208_v4 = vld [vmem:[%s4951_s0 + $0x1d0] sm:$0xff]  ;;  %v209_v5 = vld [vmem:[%s4951_s0 + $0x1d8] sm:$0xff]  ;;  %v235_v8 = vpack.c.bf16 %v193_v3, %v192_v2  ;;  %v163_v11 = vld [vmem:[%s4951_s0 + $0x68] sm:$0xff] }
  0x12   :  { %v243_v9 = vpack.c.bf16 %v209_v5, %v208_v4  ;;  %v178_v12 = vld [vmem:[%s4951_s0 + $0xe0] sm:$0xff]  ;;  %v179_v13 = vld [vmem:[%s4951_s0 + $0xe8] sm:$0xff]  ;;  %v220_v18 = vpack.c.bf16 %v163_v11, %v162_v10  ;;  %v196_v26 = vld [vmem:[%s4951_s0 + $0x170] sm:$0xff] }
  0x13   :  { %v194_v14 = vld [vmem:[%s4951_s0 + $0x160] sm:$0xff]  ;;  %v195_v15 = vld [vmem:[%s4951_s0 + $0x168] sm:$0xff]  ;;  %v228_v19 = vpack.c.bf16 %v179_v13, %v178_v12  ;;  %v197_v27 = vld [vmem:[%s4951_s0 + $0x178] sm:$0xff] }
  0x14   :  { %v210_v16 = vld [vmem:[%s4951_s0 + $0x1e0] sm:$0xff]  ;;  %v211_v17 = vld [vmem:[%s4951_s0 + $0x1e8] sm:$0xff]  ;;  %v236_v20 = vpack.c.bf16 %v195_v15, %v194_v14  ;;  %v212_v28 = vld [vmem:[%s4951_s0 + $0x1f0] sm:$0xff]  ;;  %v237_v32 = vpack.c.bf16 %v197_v27, %v196_v26 }
  0x15   :  { %v244_v21 = vpack.c.bf16 %v211_v17, %v210_v16  ;;  %v213_v29 = vld [vmem:[%s4951_s0 + $0x1f8] sm:$0xff] }
  0x16   :  { %2261 = vmatmul.msk.bf16.gmra.mxu0 %vm247_vm1, %v215_v22  ;;  %2269 = vmatmul.msk.bf16.gmra.mxu1 %vm247_vm1, %v223_v23  ;;  %v164_v22 = vld [vmem:[%s4951_s0 + $0x70] sm:$0xff]  ;;  %v165_v23 = vld [vmem:[%s4951_s0 + $0x78] sm:$0xff]  ;;  %v245_v33 = vpack.c.bf16 %v213_v29, %v212_v28 }
  0x17   :  { %2277 = vmatmul.msk.bf16.gmra.mxu2 %vm247_vm1, %v231_v24  ;;  %v180_v24 = vld [vmem:[%s4951_s0 + $0xf0] sm:$0xff]  ;;  %v221_v30 = vpack.c.bf16 %v165_v23, %v164_v22 }
  0x18   :  { %2285 = vmatmul.msk.bf16.gmra.mxu3 %vm247_vm1, %v239_v25  ;;  %v181_v25 = vld [vmem:[%s4951_s0 + $0xf8] sm:$0xff] }
  0x19   :  { %v229_v31 = vpack.c.bf16 %v181_v25, %v180_v24 }
  0x26   :  { %2262 = vmatmul.msk.bf16.gmra.mxu0 %vm247_vm1, %v216_v34  ;;  %2270 = vmatmul.msk.bf16.gmra.mxu1 %vm247_vm1, %v224_v35  ;;  %v3067_v34 = vld [vmem:[%s4952_s2] ss:$0 sm:$0xff] }
  0x27   :  { %2278 = vmatmul.msk.bf16.gmra.mxu2 %vm247_vm1, %v232_v36  ;;  %v3072_v35 = vld [vmem:[%s4953_s3] ss:$0 sm:$0xff] }
  0x28   :  { %2286 = vmatmul.msk.bf16.gmra.mxu3 %vm247_vm1, %v240_v37 }
  0x36   :  { %2263 = vmatmul.msk.bf16.gmra.mxu0 %vm247_vm1, %v217_v46  ;;  %2271 = vmatmul.msk.bf16.gmra.mxu1 %vm247_vm1, %v225_v47 }
  0x37   :  { %2279 = vmatmul.msk.bf16.gmra.mxu2 %vm247_vm1, %v233_v48 }
  0x38   :  { %2287 = vmatmul.msk.bf16.gmra.mxu3 %vm247_vm1, %v241_v49 }
  0x46   :  { %2264 = vmatmul.msk.bf16.gmra.mxu0 %vm247_vm1, %v218_v58  ;;  %2272 = vmatmul.msk.bf16.gmra.mxu1 %vm247_vm1, %v226_v59 }
  0x47   :  { %2280 = vmatmul.msk.bf16.gmra.mxu2 %vm247_vm1, %v234_v60 }
  0x48   :  { %2288 = vmatmul.msk.bf16.gmra.mxu3 %vm247_vm1, %v242_v61 }
  0x56   :  { %2265 = vmatmul.msk.bf16.gmra.mxu0 %vm247_vm1, %v219_v6  ;;  %2273 = vmatmul.msk.bf16.gmra.mxu1 %vm247_vm1, %v227_v7 }
  0x57   :  { %2281 = vmatmul.msk.bf16.gmra.mxu2 %vm247_vm1, %v235_v8 }
  0x58   :  { %2289 = vmatmul.msk.bf16.gmra.mxu3 %vm247_vm1, %v243_v9 }
  0x66   :  { %2266 = vmatmul.msk.bf16.gmra.mxu0 %vm247_vm1, %v220_v18  ;;  %2274 = vmatmul.msk.bf16.gmra.mxu1 %vm247_vm1, %v228_v19 }
  0x67   :  { %2282 = vmatmul.msk.bf16.gmra.mxu2 %vm247_vm1, %v236_v20 }
  0x68   :  { %2290 = vmatmul.msk.bf16.gmra.mxu3 %vm247_vm1, %v244_v21 }
  0x76   :  { %2267 = vmatmul.msk.bf16.gmra.mxu0 %vm247_vm1, %v221_v30  ;;  %2275 = vmatmul.msk.bf16.gmra.mxu1 %vm247_vm1, %v229_v31 }
  0x77   :  { %2283 = vmatmul.msk.bf16.gmra.mxu2 %vm247_vm1, %v237_v32 }
  0x78   :  { %2291 = vmatmul.msk.bf16.gmra.mxu3 %vm247_vm1, %v245_v33 }
  0x83   :  { %v357_v36 = vpop.f32.mrf.mxu0  ;;  %v397_v37 = vpop.f32.mrf.mxu1 }
  0x84   :  { %v716_v38 = vmul.f32 %v3067_v34, %v357_v36  ;;  %v732_v39 = vmul.f32 %v3067_v34, %v397_v37 }
  0x86   :  { %v3077_v40 = vadd.f32 %v3072_v35, %v716_v38  ;;  %v3080_v41 = vadd.f32 %v3072_v35, %v732_v39 }
  0x88   :  { %v2292_v42 = vmul.f32 -1.442695, %v3077_v40  ;;  %v2308_v43 = vmul.f32 -1.442695, %v3080_v41 }
  0x8a   :  { %2552 = vpow2.f32 %v2292_v42  ;;  %v437_v44 = vpop.f32.mrf.mxu2 }
  0x8b   :  { %v477_v45 = vpop.f32.mrf.mxu3  ;;  %2554 = vpow2.f32 %v2308_v43  ;;  %v748_v46 = vmul.f32 %v3067_v34, %v437_v44  ;;  %v359_v48 = vpop.f32.mrf.mxu0 }
  0x8c   :  { %v764_v47 = vmul.f32 %v3067_v34, %v477_v45  ;;  %v399_v49 = vpop.f32.mrf.mxu1  ;;  %v717_v50 = vmul.f32 %v3067_v34, %v359_v48 }
  0x8d   :  { %v733_v51 = vmul.f32 %v3067_v34, %v399_v49  ;;  %v3089_v52 = vadd.f32 %v3072_v35, %v748_v46 }
  0x8e   :  { %v3092_v53 = vadd.f32 %v3072_v35, %v764_v47  ;;  %v3095_v54 = vadd.f32 %v3072_v35, %v717_v50 }
  0x8f   :  { %v3098_v55 = vadd.f32 %v3072_v35, %v733_v51  ;;  %v2324_v56 = vmul.f32 -1.442695, %v3089_v52 }
  0x90   :  { %v2340_v57 = vmul.f32 -1.442695, %v3092_v53  ;;  %v2553_v58 = vpop.eup %2552  ;;  %v2293_v61 = vmul.f32 -1.442695, %v3095_v54 }
  0x91   :  { %v2555_v59 = vpop.eup %2554  ;;  %v3102_v60 = vadd.f32 1.0, %v2553_v58  ;;  %2556 = vpow2.f32 %v2324_v56  ;;  %v2309_v63 = vmul.f32 -1.442695, %v3098_v55 }
  0x92   :  { %v3105_v62 = vadd.f32 1.0, %v2555_v59  ;;  %2558 = vpow2.f32 %v2340_v57  ;;  %v439_v0 = vpop.f32.mrf.mxu2 }
  0x93   :  { %2560 = vrcp.f32 %v3102_v60  ;;  %v749_v1 = vmul.f32 %v3067_v34, %v439_v0  ;;  %v479_v4 = vpop.f32.mrf.mxu3  ;;  %v1115_v8 = vand.u32 2147483648, %v3102_v60  ;;  %v1113_v12 = vand.u32 2147483647, %v3102_v60  ;;  %v362_v14 = vpop.f32.mrf.mxu0 }
  0x94   :  { %2562 = vrcp.f32 %v3105_v62  ;;  %v765_v13 = vmul.f32 %v3067_v34, %v479_v4  ;;  %v402_v15 = vpop.f32.mrf.mxu1  ;;  %vm1109_vm2 = vweird.f32 %v3102_v60  ;;  %v1355_v18 = vand.u32 2147483648, %v3105_v62 }
  0x95   :  { %2564 = vpow2.f32 %v2293_v61  ;;  %v3112_v3 = vadd.f32 %v3072_v35, %v749_v1  ;;  %vm1349_vm3 = vweird.f32 %v3105_v62  ;;  %v1353_v22 = vand.u32 2147483647, %v3105_v62 }
  0x96   :  { %2566 = vpow2.f32 %v2309_v63  ;;  %v1116_v23 = vor.u32 1.1754944e-38, %v1115_v8  ;;  %v718_v25 = vmul.f32 %v3067_v34, %v362_v14  ;;  %v734_v26 = vmul.f32 %v3067_v34, %v402_v15 }
  0x97   :  { %v2557_v2 = vpop.eup %2556  ;;  %v2325_v19 = vmul.f32 -1.442695, %v3112_v3  ;;  %vm3139_vm4 = vcmp.eq.f32.partialorder %v1113_v12, 8.507059e+37  ;;  %v3148_v31 = vadd.f32 %v3072_v35, %v765_v13  ;;  %v1356_v33 = vor.u32 1.1754944e-38, %v1355_v18 }
  0x98   :  { %v2559_v5 = vpop.eup %2558  ;;  %v3114_v6 = vadd.f32 1.0, %v2557_v2  ;;  %vm3155_vm6 = vcmp.eq.f32.partialorder %v1353_v22, 8.507059e+37  ;;  %v3166_v45 = vadd.f32 %v3072_v35, %v718_v25  ;;  %v3169_v46 = vadd.f32 %v3072_v35, %v734_v26 }
  0x99   :  { %v3116_v7 = vpop.eup %2560  ;;  %v3119_v9 = vadd.f32 1.0, %v2559_v5  ;;  %v2341_v49 = vmul.f32 -1.442695, %v3148_v31 }
  0x9a   :  { %v3121_v10 = vpop.eup %2562  ;;  %v1105_v11 = vmul.f32 %v3116_v7, %v3102_v60  ;;  %2568 = vrcp.f32 %v3114_v6  ;;  %vm1110_vm5 = vweird.f32 %v3116_v7  ;;  %v1595_v39 = vand.u32 2147483648, %v3114_v6 }
  0x9b   :  { %v2565_v16 = vpop.eup %2564  ;;  %v1345_v17 = vmul.f32 %v3121_v10, %v3105_v62  ;;  %2570 = vrcp.f32 %v3119_v9  ;;  %v1835_v42 = vand.u32 2147483648, %v3119_v9  ;;  %v1593_v44 = vand.u32 2147483647, %v3114_v6  ;;  %vm3181_vm8 = vmor %vm1109_vm2, %vm1110_vm5  ;;  %v364_v50 = vpop.f32.mrf.mxu0 }
  0x9c   :  { %v2567_v20 = vpop.eup %2566  ;;  %v1106_v21 = vsub.f32 1.0, %v1105_v11  ;;  %v3143_v29 = vadd.f32 1.0, %v2565_v16  ;;  %2572 = vpow2.f32 %v2325_v19  ;;  %vm1350_vm7 = vweird.f32 %v3121_v10 }
  0x9d   :  { %v1346_v24 = vsub.f32 1.0, %v1345_v17  ;;  %v3145_v30 = vadd.f32 1.0, %v2567_v20  ;;  %vm1589_vm9 = vweird.f32 %v3114_v6  ;;  %v1596_v59 = vor.u32 1.1754944e-38, %v1595_v39  ;;  %vm3197_vm10 = vmor %vm1349_vm3, %vm1350_vm7 }
  0x9e   :  { %v1107_v27 = vmul.f32 %v3116_v7, %v1106_v21  ;;  %2574 = vrcp.f32 %v3143_v29  ;;  %v1128_v57 = vand.u32 2147483647, %v3143_v29  ;;  %v1833_v61 = vand.u32 2147483647, %v3119_v9  ;;  %v442_v21 = vpop.f32.mrf.mxu2 }
  0x9f   :  { %v1347_v32 = vmul.f32 %v3121_v10, %v1346_v24  ;;  %2576 = vrcp.f32 %v3145_v30  ;;  %v3193_v60 = vor.u32 1.1754944e-38, %v1835_v42  ;;  %vm3203_vm12 = vcmp.eq.f32.partialorder %v1593_v44, 8.507059e+37  ;;  %v482_v42 = vpop.f32.mrf.mxu3 }
  0xa0   :  { %v3152_v36 = vpop.eup %2568  ;;  %v1108_v37 = vadd.f32 %v3116_v7, %v1107_v27  ;;  %vm1124_vm13 = vweird.f32 %v3143_v29  ;;  %v1130_v4 = vand.u32 2147483648, %v3143_v29  ;;  %2578 = vpow2.f32 %v2341_v49 }
  0xa1   :  { %v1585_v43 = vmul.f32 %v3152_v36, %v3114_v6  ;;  %v3171_v47 = vpop.eup %2570  ;;  %v1348_v48 = vadd.f32 %v3121_v10, %v1347_v32  ;;  %vm1590_vm11 = vweird.f32 %v3152_v36  ;;  %vm3218_vm14 = vcmp.eq.f32.partialorder %v1128_v57, 8.507059e+37 }
  0xa2   :  { %v1825_v56 = vmul.f32 %v3171_v47, %v3119_v9  ;;  %v1112_v58 = vsel %vm3181_vm8, %v3116_v7, %v1108_v37  ;;  %v2573_v63 = vpop.eup %2572  ;;  %vm1829_vm15 = vweird.f32 %v3119_v9  ;;  %v1370_v16 = vand.u32 2147483648, %v3145_v30  ;;  %vm3236_vm1 = vmor %vm1589_vm9, %vm1590_vm11 }
  0xa3   :  { %v1586_v51 = vsub.f32 1.0, %v1585_v43  ;;  %v1352_v62 = vsel %vm3197_vm10, %v3121_v10, %v1348_v48  ;;  %v3212_v8 = vadd.f32 1.0, %v2573_v63  ;;  %v1117_v11 = vsel %vm3139_vm4, %v1116_v23, %v1112_v58 }
  0xa4   :  { %v2575_v5 = vpop.eup %2574  ;;  %v1826_v7 = vsub.f32 1.0, %v1825_v56  ;;  %v1368_v10 = vand.u32 2147483647, %v3145_v30  ;;  %v2294_v17 = vmul.f32 -1.442695, %v3166_v45  ;;  %v1357_v18 = vsel %vm3155_vm6, %v1356_v33, %v1352_v62 }
  0xa5   :  { %v1587_v1 = vmul.f32 %v3152_v36, %v1586_v51  ;;  %v1120_v13 = vmul.f32 %v2575_v5, %v3143_v29  ;;  %v2577_v15 = vpop.eup %2576  ;;  %2580 = vrcp.f32 %v3212_v8  ;;  %vm1364_vm0 = vweird.f32 %v3145_v30 }
  0xa6   :  { %v1360_v20 = vmul.f32 %v2577_v15, %v3145_v30  ;;  %v2064_v22 = vmul.f32 %v1117_v11, %v3077_v40  ;;  %v1827_v24 = vmul.f32 %v3171_v47, %v1826_v7  ;;  %vm1830_vm2 = vweird.f32 %v3171_v47  ;;  %v2579_v28 = vpop.eup %2578 }
  0xa7   :  { %v1588_v12 = vadd.f32 %v3152_v36, %v1587_v1  ;;  %v1121_v19 = vsub.f32 1.0, %v1120_v13  ;;  %v1131_v25 = vor.u32 1.1754944e-38, %v1130_v4  ;;  %vm1125_vm3 = vweird.f32 %v2575_v5  ;;  %vm3279_vm10 = vmor %vm1829_vm15, %vm1830_vm2  ;;  %v444_v13 = vpop.f32.mrf.mxu2 }
  0xa8   :  { %v1361_v40 = vsub.f32 1.0, %v1360_v20  ;;  %v2080_v32 = vmul.f32 %v1357_v18, %v3080_v41  ;;  %vm3246_vm4 = vcmp.eq.f32.partialorder %v1833_v61, 8.507059e+37  ;;  %vm3250_vm5 = vcmp.eq.f32.partialorder %v1368_v10, 8.507059e+37  ;;  %vm1126_vm8 = vmor %vm1124_vm13, %vm1125_vm3 }
  0xa9   :  { %v1592_v26 = vsel %vm3236_vm1, %v3152_v36, %v1588_v12  ;;  %v1122_v27 = vmul.f32 %v2575_v5, %v1121_v19  ;;  %v1371_v37 = vor.u32 1.1754944e-38, %v1370_v16  ;;  %2582 = vpow2.f32 %v2294_v17  ;;  %v404_v12 = vpop.f32.mrf.mxu1 }
  0xaa   :  { %v1362_v39 = vmul.f32 %v2577_v15, %v1361_v40  ;;  %vm1365_vm6 = vweird.f32 %v2577_v15  ;;  %vm1604_vm7 = vweird.f32 %v3212_v8  ;;  %v3255_v36 = vadd.f32 1.0, %v2579_v28 }
  0xab   :  { %v1123_v38 = vadd.f32 %v2575_v5, %v1122_v27  ;;  %v2581_v43 = vpop.eup %2580  ;;  %v1597_v41 = vsel %vm3203_vm12, %v1596_v59, %v1592_v26  ;;  %v1828_v44 = vadd.f32 %v3171_v47, %v1827_v24  ;;  %v2310_v48 = vmul.f32 -1.442695, %v3169_v46  ;;  %vm1366_vm9 = vmor %vm1364_vm0, %vm1365_vm6  ;;  %v484_v27 = vpop.f32.mrf.mxu3 }
  0xac   :  { %v750_v49 = vmul.f32 %v3067_v34, %v442_v21  ;;  %v1363_v56 = vadd.f32 %v2577_v15, %v1362_v39  ;;  %v1600_v57 = vmul.f32 %v2581_v43, %v3212_v8  ;;  %v1608_v58 = vand.u32 2147483647, %v3212_v8 }
  0xad   :  { %v1127_v51 = vsel %vm1126_vm8, %v2575_v5, %v1123_v38  ;;  %v1610_v29 = vand.u32 2147483648, %v3212_v8  ;;  %2584 = vrcp.f32 %v3255_v36  ;;  %v766_v61 = vmul.f32 %v3067_v34, %v482_v42 }
  0xae   :  { %v1132_v59 = vsel %vm3218_vm14, %v1131_v25, %v1127_v51  ;;  %v1367_v1 = vsel %vm1366_vm9, %v2577_v15, %v1363_v56  ;;  %v1601_v2 = vsub.f32 1.0, %v1600_v57  ;;  %v719_v30 = vmul.f32 %v3067_v34, %v364_v50 }
  0xaf   :  { %v2065_v0 = vmul.f32 %v1132_v59, %v3095_v54  ;;  %v2583_v4 = vpop.eup %2582  ;;  %v1832_v5 = vsel %vm3279_vm10, %v3171_v47, %v1828_v44  ;;  %v1372_v62 = vsel %vm3250_vm5, %v1371_v37, %v1367_v1  ;;  %2586 = vpow2.f32 %v2310_v48 }
  0xb0   :  { %v3291_v9 = vadd.f32 %v3072_v35, %v750_v49  ;;  %v2081_v11 = vmul.f32 %v1372_v62, %v3098_v55  ;;  %v1602_v54 = vmul.f32 %v2581_v43, %v1601_v2  ;;  %vm1605_vm11 = vweird.f32 %v2581_v43 }
  0xb1   :  { %v2359_v7 = vpack.c.bf16 %v2065_v0, %v2064_v22  ;;  %v2096_v14 = vmul.f32 %v1597_v41, %v3089_v52  ;;  %v3295_v15 = vadd.f32 1.0, %v2583_v4  ;;  %v3299_v10 = vadd.f32 %v3072_v35, %v766_v61  ;;  %vm1606_vm12 = vmor %vm1604_vm7, %vm1605_vm11 }
  0xb2   :  { %v2326_v47 = vmul.f32 -1.442695, %v3291_v9  ;;  %v1837_v16 = vsel %vm3246_vm4, %v3193_v60, %v1832_v5  ;;  %v2399_v55 = vpack.c.bf16 %v2081_v11, %v2080_v32  ;;  %v1603_v17 = vadd.f32 %v2581_v43, %v1602_v54 }
  0xb3   :  { %2360 = vst [vmem:[%s4954_s4] sm:$0xff] %v2359_v7   ;;  %v3308_v18 = vadd.f32 %v3072_v35, %v719_v30  ;;  %v2585_v52 = vpop.eup %2584  ;;  %v1611_v19 = vor.u32 1.1754944e-38, %v1610_v29  ;;  %2588 = vrcp.f32 %v3295_v15  ;;  %v735_v20 = vmul.f32 %v3067_v34, %v404_v12 }
  0xb4   :  { %v751_v60 = vmul.f32 %v3067_v34, %v444_v13  ;;  %2523 = vst [vmem:[%s4954_s4 + $0x40] sm:$0xff] %v2399_v55   ;;  %v1607_v21 = vsel %vm1606_vm12, %v2581_v43, %v1603_v17  ;;  %vm1609_vm13 = vcmp.eq.f32.partialorder %v1608_v58, 8.507059e+37  ;;  %v1840_v22 = vmul.f32 %v2585_v52, %v3255_v36 }
  0xb5   :  { %2590 = vpow2.f32 %v2326_v47  ;;  %v2587_v23 = vpop.eup %2586  ;;  %v1612_v24 = vsel %vm1609_vm13, %v1611_v19, %v1607_v21  ;;  %v1848_v8 = vand.u32 2147483647, %v3255_v36  ;;  %v1850_v25 = vand.u32 2147483648, %v3255_v36 }
  0xb6   :  { %v2342_v26 = vmul.f32 -1.442695, %v3299_v10  ;;  %v2097_v40 = vmul.f32 %v1612_v24, %v3112_v3  ;;  %v1841_v28 = vsub.f32 1.0, %v1840_v22  ;;  %v3323_v32 = vadd.f32 1.0, %v2587_v23 }
  0xb7   :  { %v2295_v6 = vmul.f32 -1.442695, %v3308_v18  ;;  %vm1845_vm14 = vweird.f32 %v2585_v52  ;;  %v3327_v33 = vadd.f32 %v3072_v35, %v735_v20  ;;  %v3330_v37 = vadd.f32 %v3072_v35, %v751_v60 }
  0xb8   :  { %2592 = vpow2.f32 %v2342_v26  ;;  %v2439_v38 = vpack.c.bf16 %v2097_v40, %v2096_v14  ;;  %v1842_v39 = vmul.f32 %v2585_v52, %v1841_v28  ;;  %v767_v42 = vmul.f32 %v3067_v34, %v484_v27 }
  0xb9   :  { %2594 = vrcp.f32 %v3323_v32  ;;  %v3334_v3 = vpop.eup %2588  ;;  %v2311_v43 = vmul.f32 -1.442695, %v3327_v33  ;;  %v2112_v44 = vmul.f32 %v1837_v16, %v3092_v53  ;;  %vm1844_vm15 = vweird.f32 %v3255_v36 }
  0xba   :  { %2596 = vpow2.f32 %v2295_v6  ;;  %2531 = vst [vmem:[%s4954_s4 + $0x80] sm:$0xff] %v2439_v38   ;;  %v1843_v48 = vadd.f32 %v2585_v52, %v1842_v39  ;;  %v1135_v49 = vmul.f32 %v3334_v3, %v3295_v15  ;;  %vm1846_vm0 = vmor %vm1844_vm15, %vm1845_vm14  ;;  %v1851_v50 = vor.u32 1.1754944e-38, %v1850_v25 }
  0xbb   :  { %v2591_v41 = vpop.eup %2590  ;;  %2598 = vpow2.f32 %v2311_v43  ;;  %v2327_v56 = vmul.f32 -1.442695, %v3330_v37  ;;  %vm1849_vm1 = vcmp.eq.f32.partialorder %v1848_v8, 8.507059e+37  ;;  %v3349_v58 = vadd.f32 %v3072_v35, %v767_v42 }
  0xbc   :  { %v3345_v51 = vadd.f32 1.0, %v2591_v41  ;;  %v1847_v57 = vsel %vm1846_vm0, %v2585_v52, %v1843_v48  ;;  %v1136_v53 = vsub.f32 1.0, %v1135_v49  ;;  %vm1139_vm2 = vweird.f32 %v3295_v15 }
  0xbd   :  { %v1852_v29 = vsel %vm1849_vm1, %v1851_v50, %v1847_v57  ;;  %v1143_v36 = vand.u32 2147483647, %v3295_v15  ;;  %v1145_v1 = vand.u32 2147483648, %v3295_v15  ;;  %v1383_v5 = vand.u32 2147483647, %v3323_v32 }
  0xbe   :  { %v2593_v59 = vpop.eup %2592  ;;  %2600 = vrcp.f32 %v3345_v51  ;;  %v2113_v63 = vmul.f32 %v1852_v29, %v3148_v31  ;;  %v1137_v0 = vmul.f32 %v3334_v3, %v1136_v53  ;;  %v2343_v62 = vmul.f32 -1.442695, %v3349_v58 }
  0xbf   :  { %v3354_v61 = vpop.eup %2594  ;;  %v3359_v2 = vadd.f32 1.0, %v2593_v59  ;;  %2602 = vpow2.f32 %v2327_v56  ;;  %vm1140_vm3 = vweird.f32 %v3334_v3  ;;  %vm3368_vm4 = vcmp.eq.f32.partialorder %v1143_v36, 8.507059e+37 }
  0xc0   :  { %v2597_v30 = vpop.eup %2596  ;;  %v1375_v4 = vmul.f32 %v3354_v61, %v3323_v32  ;;  %v2479_v7 = vpack.c.bf16 %v2113_v63, %v2112_v44  ;;  %v1138_v11 = vadd.f32 %v3334_v3, %v1137_v0  ;;  %v1385_v13 = vand.u32 2147483648, %v3323_v32  ;;  %vm3384_vm5 = vmor %vm1139_vm2, %vm1140_vm3  ;;  %v367_v63 = vpop.f32.mrf.mxu0 }
  0xc1   :  { %2604 = vrcp.f32 %v3359_v2  ;;  %v2599_v31 = vpop.eup %2598  ;;  %v1623_v14 = vand.u32 2147483647, %v3345_v51  ;;  %v1625_v47 = vand.u32 2147483648, %v3345_v51  ;;  %v3378_v16 = vadd.f32 1.0, %v2597_v30  ;;  %v407_v0 = vpop.f32.mrf.mxu1 }
  0xc2   :  { %v1376_v12 = vsub.f32 1.0, %v1375_v4  ;;  %2539 = vst [vmem:[%s4954_s4 + $0xc0] sm:$0xff] %v2479_v7   ;;  %v3380_v55 = vadd.f32 1.0, %v2599_v31  ;;  %2606 = vpow2.f32 %v2343_v62  ;;  %v1146_v19 = vor.u32 1.1754944e-38, %v1145_v1 }
  0xc3   :  { %vm1379_vm6 = vweird.f32 %v3323_v32  ;;  %vm3390_vm7 = vcmp.eq.f32.partialorder %v1383_v5, 8.507059e+37  ;;  %v1142_v21 = vsel %vm3384_vm5, %v3334_v3, %v1138_v11  ;;  %vm1380_vm8 = vweird.f32 %v3354_v61  ;;  %v447_v5 = vpop.f32.mrf.mxu2 }
  0xc4   :  { %v2601_v17 = vpop.eup %2600  ;;  %v1377_v20 = vmul.f32 %v3354_v61, %v1376_v12  ;;  %2608 = vrcp.f32 %v3378_v16  ;;  %v1386_v24 = vor.u32 1.1754944e-38, %v1385_v13  ;;  %vm1619_vm9 = vweird.f32 %v3345_v51  ;;  %vm3414_vm11 = vmor %vm1379_vm6, %vm1380_vm8 }
  0xc5   :  { %v1615_v15 = vmul.f32 %v2601_v17, %v3345_v51  ;;  %v2603_v22 = vpop.eup %2602  ;;  %v1865_v8 = vand.u32 2147483648, %v3359_v2  ;;  %vm3405_vm10 = vcmp.eq.f32.partialorder %v1623_v14, 8.507059e+37  ;;  %v1626_v40 = vor.u32 1.1754944e-38, %v1625_v47 }
  0xc6   :  { %v1378_v23 = vadd.f32 %v3354_v61, %v1377_v20  ;;  %2610 = vrcp.f32 %v3380_v55  ;;  %v1147_v28 = vsel %vm3368_vm4, %v1146_v19, %v1142_v21  ;;  %vm1859_vm12 = vweird.f32 %v3359_v2 }
  0xc7   :  { %v3403_v25 = vpop.eup %2604  ;;  %v1616_v26 = vsub.f32 1.0, %v1615_v15  ;;  %v1863_v39 = vand.u32 2147483647, %v3359_v2  ;;  %v1158_v42 = vand.u32 2147483647, %v3378_v16  ;;  %vm1620_vm13 = vweird.f32 %v2601_v17 }
  0xc8   :  { %v1855_v38 = vmul.f32 %v3403_v25, %v3359_v2  ;;  %v2607_v3 = vpop.eup %2606  ;;  %v1382_v43 = vsel %vm3414_vm11, %v3354_v61, %v1378_v23  ;;  %v1160_v32 = vand.u32 2147483648, %v3378_v16  ;;  %v3427_v48 = vor.u32 1.1754944e-38, %v1865_v8  ;;  %vm1621_vm0 = vmor %vm1619_vm9, %vm1620_vm13 }
  0xc9   :  { %v1617_v41 = vmul.f32 %v2601_v17, %v1616_v26  ;;  %v1398_v49 = vand.u32 2147483647, %v3380_v55  ;;  %v3430_v50 = vadd.f32 1.0, %v2603_v22  ;;  %v3433_v57 = vmul.f32 %v1147_v28, %v3166_v45 }
  0xca   :  { %v1856_v44 = vsub.f32 1.0, %v1855_v38  ;;  %v2609_v56 = vpop.eup %2608  ;;  %vm1860_vm14 = vweird.f32 %v3403_v25  ;;  %vm1154_vm15 = vweird.f32 %v3378_v16  ;;  %v1387_v59 = vsel %vm3390_vm7, %v1386_v24, %v1382_v43  ;;  %v487_v38 = vpop.f32.mrf.mxu3 }
  0xcb   :  { %v1618_v53 = vadd.f32 %v2601_v17, %v1617_v41  ;;  %v1150_v36 = vmul.f32 %v2609_v56, %v3378_v16  ;;  %vm3443_vm1 = vcmp.eq.f32.partialorder %v1158_v42, 8.507059e+37  ;;  %vm1394_vm2 = vweird.f32 %v3380_v55  ;;  %vm3475_vm5 = vmor %vm1859_vm12, %vm1860_vm14 }
  0xcc   :  { %v1857_v29 = vmul.f32 %v3403_v25, %v1856_v44  ;;  %v3448_v45 = vadd.f32 1.0, %v2607_v3  ;;  %v2611_v1 = vpop.eup %2610  ;;  %v1161_v4 = vor.u32 1.1754944e-38, %v1160_v32  ;;  %v1400_v51 = vand.u32 2147483648, %v3380_v55 }
  0xcd   :  { %v1622_v30 = vsel %vm1621_vm0, %v2601_v17, %v1618_v53  ;;  %2612 = vrcp.f32 %v3430_v50  ;;  %v1151_v11 = vsub.f32 1.0, %v1150_v36  ;;  %v1390_v31 = vmul.f32 %v2611_v1, %v3380_v55 }
  0xce   :  { %v1627_v62 = vsel %vm3405_vm10, %v1626_v40, %v1622_v30  ;;  %v3455_v7 = vadd.f32 %v3403_v25, %v1857_v29  ;;  %vm3458_vm3 = vcmp.eq.f32.partialorder %v1398_v49, 8.507059e+37  ;;  %vm1155_vm4 = vweird.f32 %v2609_v56  ;;  %v449_v29 = vpop.f32.mrf.mxu2 }
  0xcf   :  { %v1640_v12 = vand.u32 2147483648, %v3430_v50  ;;  %v720_v13 = vmul.f32 %v3067_v34, %v367_v63  ;;  %v736_v14 = vmul.f32 %v3067_v34, %v407_v0  ;;  %v1152_v47 = vmul.f32 %v2609_v56, %v1151_v11  ;;  %vm1156_vm9 = vmor %vm1154_vm15, %vm1155_vm4 }
  0xd0   :  { %v1391_v17 = vsub.f32 1.0, %v1390_v31  ;;  %v1638_v52 = vand.u32 2147483647, %v3430_v50  ;;  %2614 = vrcp.f32 %v3448_v45  ;;  %v2082_v19 = vmul.f32 %v1387_v59, %v3169_v46  ;;  %v409_v59 = vpop.f32.mrf.mxu1 }
  0xd1   :  { %v3469_v20 = vmul.f32 %v1627_v62, %v3291_v9  ;;  %vm1395_vm6 = vweird.f32 %v2611_v1  ;;  %v1401_v21 = vor.u32 1.1754944e-38, %v1400_v51  ;;  %v1862_v15 = vsel %vm3475_vm5, %v3403_v25, %v3455_v7 }
  0xd2   :  { %v1153_v22 = vadd.f32 %v2609_v56, %v1152_v47  ;;  %v1392_v46 = vmul.f32 %v2611_v1, %v1391_v17  ;;  %vm1634_vm7 = vweird.f32 %v3430_v50  ;;  %v1641_v9 = vor.u32 1.1754944e-38, %v1640_v12  ;;  %vm1396_vm11 = vmor %vm1394_vm2, %vm1395_vm6  ;;  %v489_v60 = vpop.f32.mrf.mxu3 }
  0xd3   :  { %v2613_v23 = vpop.eup %2612  ;;  %vm3484_vm8 = vcmp.eq.f32.partialorder %v1863_v39, 8.507059e+37  ;;  %v1878_v2 = vand.u32 2147483647, %v3448_v45  ;;  %v3493_v8 = vadd.f32 %v3072_v35, %v720_v13  ;;  %v3496_v25 = vadd.f32 %v3072_v35, %v736_v14 }
  0xd4   :  { %v752_v26 = vmul.f32 %v3067_v34, %v447_v5  ;;  %v1157_v27 = vsel %vm1156_vm9, %v2609_v56, %v1153_v22  ;;  %v1393_v40 = vadd.f32 %v2611_v1, %v1392_v46  ;;  %v1630_v28 = vmul.f32 %v2613_v23, %v3430_v50  ;;  %v369_v56 = vpop.f32.mrf.mxu0 }
  0xd5   :  { %vm3500_vm10 = vcmp.eq.f32.partialorder %v1638_v52, 8.507059e+37  ;;  %v1880_v16 = vand.u32 2147483648, %v3448_v45  ;;  %v1162_v39 = vsel %vm3443_vm1, %v1161_v4, %v1157_v27  ;;  %vm1635_vm12 = vweird.f32 %v2613_v23 }
  0xd6   :  { %v2296_v42 = vmul.f32 -1.442695, %v3493_v8  ;;  %v2312_v3 = vmul.f32 -1.442695, %v3496_v25  ;;  %v2615_v43 = vpop.eup %2614  ;;  %v2067_v41 = vmul.f32 %v1162_v39, %v3308_v18  ;;  %v1397_v32 = vsel %vm1396_vm11, %v2611_v1, %v1393_v40  ;;  %vm1636_vm14 = vmor %vm1634_vm7, %vm1635_vm12 }
  0xd7   :  { %v1631_v44 = vsub.f32 1.0, %v1630_v28  ;;  %v3514_v49 = vadd.f32 %v3072_v35, %v752_v26  ;;  %v1402_v53 = vsel %vm3458_vm3, %v1401_v21, %v1397_v32  ;;  %v1870_v55 = vmul.f32 %v2615_v43, %v3448_v45 }
  0xd8   :  { %vm1875_vm13 = vweird.f32 %v2615_v43  ;;  %2616 = vpow2.f32 %v2296_v42  ;;  %v2364_v36 = vpack.c.bf16 %v2067_v41, %v3433_v57  ;;  %v2083_v61 = vmul.f32 %v1402_v53, %v3327_v33 }
  0xd9   :  { %v1632_v18 = vmul.f32 %v2613_v23, %v1631_v44  ;;  %2618 = vpow2.f32 %v2312_v3  ;;  %v1871_v63 = vsub.f32 1.0, %v1870_v55  ;;  %v2328_v0 = vmul.f32 -1.442695, %v3514_v49 }
  0xda   :  { %v768_v1 = vmul.f32 %v3067_v34, %v487_v38  ;;  %v721_v30 = vmul.f32 %v3067_v34, %v369_v56  ;;  %2516 = vst [vmem:[%s4954_s4 + $0x8] sm:$0xff] %v2364_v36   ;;  %v2404_v4 = vpack.c.bf16 %v2083_v61, %v2082_v19  ;;  %v737_v5 = vmul.f32 %v3067_v34, %v409_v59  ;;  %v412_v56 = vpop.f32.mrf.mxu1 }
  0xdb   :  { %v1633_v51 = vadd.f32 %v2613_v23, %v1632_v18  ;;  %v753_v57 = vmul.f32 %v3067_v34, %v449_v29  ;;  %v1872_v33 = vmul.f32 %v2615_v43, %v1871_v63  ;;  %2620 = vpow2.f32 %v2328_v0 }
  0xdc   :  { %v3533_v62 = vadd.f32 %v3072_v35, %v768_v1  ;;  %v3536_v7 = vadd.f32 %v3072_v35, %v721_v30  ;;  %v1867_v11 = vsel %vm3484_vm8, %v3427_v48, %v1862_v15  ;;  %2524 = vst [vmem:[%s4954_s4 + $0x48] sm:$0xff] %v2404_v4   ;;  %vm1874_vm15 = vweird.f32 %v3448_v45 }
  0xdd   :  { %v1637_v31 = vsel %vm1636_vm14, %v2613_v23, %v1633_v51  ;;  %vm3545_vm0 = vcmp.eq.f32.partialorder %v1878_v2, 8.507059e+37  ;;  %v1873_v13 = vadd.f32 %v2615_v43, %v1872_v33  ;;  %v3553_v48 = vadd.f32 %v3072_v35, %v737_v5  ;;  %vm1876_vm1 = vmor %vm1874_vm15, %vm1875_vm13 }
  0xde   :  { %v2617_v54 = vpop.eup %2616  ;;  %v1642_v12 = vsel %vm3500_vm10, %v1641_v9, %v1637_v31  ;;  %v2344_v14 = vmul.f32 -1.442695, %v3533_v62  ;;  %v1881_v45 = vor.u32 1.1754944e-38, %v1880_v16  ;;  %v3560_v19 = vadd.f32 %v3072_v35, %v753_v57 }
  0xdf   :  { %v2619_v47 = vpop.eup %2618  ;;  %v2099_v17 = vmul.f32 %v1642_v12, %v3330_v37  ;;  %v3557_v52 = vadd.f32 1.0, %v2617_v54  ;;  %v1877_v21 = vsel %vm1876_vm1, %v2615_v43, %v1873_v13  ;;  %v2297_v22 = vmul.f32 -1.442695, %v3536_v7  ;;  %v372_v43 = vpop.f32.mrf.mxu0 }
  0xe0   :  { %v3562_v15 = vadd.f32 1.0, %v2619_v47  ;;  %2622 = vpow2.f32 %v2344_v14  ;;  %v2114_v46 = vmul.f32 %v1867_v11, %v3299_v10  ;;  %v1882_v37 = vsel %vm3545_vm0, %v1881_v45, %v1877_v21 }
  0xe1   :  { %v2444_v9 = vpack.c.bf16 %v2099_v17, %v3469_v20  ;;  %2624 = vrcp.f32 %v3557_v52  ;;  %v2621_v23 = vpop.eup %2620  ;;  %v2115_v24 = vmul.f32 %v1882_v37, %v3349_v58  ;;  %v2313_v2 = vmul.f32 -1.442695, %v3553_v48 }
  0xe2   :  { %2626 = vrcp.f32 %v3562_v15  ;;  %v769_v26 = vmul.f32 %v3067_v34, %v489_v60  ;;  %v3577_v10 = vadd.f32 1.0, %v2621_v23  ;;  %v2329_v27 = vmul.f32 -1.442695, %v3560_v19 }
  0xe3   :  { %2532 = vst [vmem:[%s4954_s4 + $0x88] sm:$0xff] %v2444_v9   ;;  %v2484_v20 = vpack.c.bf16 %v2115_v24, %v2114_v46  ;;  %2628 = vpow2.f32 %v2297_v22  ;;  %v1175_v58 = vand.u32 2147483648, %v3557_v52  ;;  %v1173_v16 = vand.u32 2147483647, %v3557_v52  ;;  %v3767_v24 = vld [vmem:[%s4953_s3] ss:$0 sm:$0xff] }
  0xe4   :  { %2630 = vrcp.f32 %v3577_v10  ;;  %v3586_v28 = vadd.f32 %v3072_v35, %v769_v26  ;;  %v1415_v38 = vand.u32 2147483648, %v3562_v15  ;;  %vm1169_vm2 = vweird.f32 %v3557_v52 }
  0xe5   :  { %2540 = vst [vmem:[%s4954_s4 + $0xc8] sm:$0xff] %v2484_v20   ;;  %2632 = vpow2.f32 %v2313_v2  ;;  %vm1409_vm3 = vweird.f32 %v3562_v15  ;;  %v1413_v32 = vand.u32 2147483647, %v3562_v15  ;;  %v1655_v44 = vand.u32 2147483648, %v3577_v10 }
  0xe6   :  { %v2623_v40 = vpop.eup %2622  ;;  %2634 = vpow2.f32 %v2329_v27  ;;  %v1176_v59 = vor.u32 1.1754944e-38, %v1175_v58  ;;  %v1653_v29 = vand.u32 2147483647, %v3577_v10  ;;  %v2345_v36 = vmul.f32 -1.442695, %v3586_v28 }
  0xe7   :  { %v3588_v6 = vpop.eup %2624  ;;  %v3592_v39 = vadd.f32 1.0, %v2623_v40  ;;  %vm3609_vm4 = vcmp.eq.f32.partialorder %v1173_v16, 8.507059e+37  ;;  %v1416_v0 = vor.u32 1.1754944e-38, %v1415_v38  ;;  %v722_v30 = vmul.f32 %v3067_v34, %v372_v43 }
  0xe8   :  { %v3594_v42 = vpop.eup %2626  ;;  %v1165_v3 = vmul.f32 %v3588_v6, %v3557_v52  ;;  %vm1649_vm5 = vweird.f32 %v3577_v10  ;;  %v738_v57 = vmul.f32 %v3067_v34, %v412_v56  ;;  %vm1170_vm6 = vweird.f32 %v3588_v6 }
  0xe9   :  { %v1405_v41 = vmul.f32 %v3594_v42, %v3562_v15  ;;  %2636 = vrcp.f32 %v3592_v39  ;;  %v2629_v53 = vpop.eup %2628  ;;  %vm3623_vm7 = vcmp.eq.f32.partialorder %v1413_v32, 8.507059e+37  ;;  %v1656_v31 = vor.u32 1.1754944e-38, %v1655_v44  ;;  %vm3647_vm10 = vmor %vm1169_vm2, %vm1170_vm6 }
  0xea   :  { %v1166_v55 = vsub.f32 1.0, %v1165_v3  ;;  %v3607_v61 = vpop.eup %2630  ;;  %v3613_v1 = vadd.f32 1.0, %v2629_v53  ;;  %vm3629_vm8 = vcmp.eq.f32.partialorder %v1653_v29, 8.507059e+37  ;;  %v1895_v34 = vand.u32 2147483648, %v3592_v39 }
  0xeb   :  { %v1406_v63 = vsub.f32 1.0, %v1405_v41  ;;  %v2633_v4 = vpop.eup %2632  ;;  %v1645_v5 = vmul.f32 %v3607_v61, %v3577_v10  ;;  %vm1410_vm9 = vweird.f32 %v3594_v42  ;;  %v3641_v45 = vadd.f32 %v3072_v35, %v722_v30 }
  0xec   :  { %v1167_v51 = vmul.f32 %v3588_v6, %v1166_v55  ;;  %2638 = vrcp.f32 %v3613_v1  ;;  %v2635_v50 = vpop.eup %2634  ;;  %v3638_v17 = vadd.f32 1.0, %v2633_v4  ;;  %vm1650_vm11 = vweird.f32 %v3607_v61  ;;  %vm3666_vm13 = vmor %vm1409_vm3, %vm1410_vm9 }
  0xed   :  { %v1407_v33 = vmul.f32 %v3594_v42, %v1406_v63  ;;  %v1646_v12 = vsub.f32 1.0, %v1645_v5  ;;  %2640 = vpow2.f32 %v2345_v36  ;;  %vm1889_vm12 = vweird.f32 %v3592_v39  ;;  %vm3681_vm14 = vmor %vm1649_vm5, %vm1650_vm11 }
  0xee   :  { %v1168_v54 = vadd.f32 %v3588_v6, %v1167_v51  ;;  %v1893_v46 = vand.u32 2147483647, %v3592_v39  ;;  %v1188_v52 = vand.u32 2147483647, %v3613_v1  ;;  %v1190_v37 = vand.u32 2147483648, %v3613_v1 }
  0xef   :  { %v3634_v14 = vpop.eup %2636  ;;  %v1408_v47 = vadd.f32 %v3594_v42, %v1407_v33  ;;  %v1647_v21 = vmul.f32 %v3607_v61, %v1646_v12  ;;  %v3662_v23 = vadd.f32 1.0, %v2635_v50  ;;  %v1896_v20 = vor.u32 1.1754944e-38, %v1895_v34 }
  0xf0   :  { %v1885_v22 = vmul.f32 %v3634_v14, %v3592_v39  ;;  %v1172_v9 = vsel %vm3647_vm10, %v3588_v6, %v1168_v54  ;;  %v3672_v27 = vadd.f32 %v3072_v35, %v738_v57  ;;  %vm1184_vm15 = vweird.f32 %v3613_v1  ;;  %v452_v39 = vpop.f32.mrf.mxu2 }
  0xf1   :  { %v1648_v2 = vadd.f32 %v3607_v61, %v1647_v21  ;;  %v1412_v58 = vsel %vm3666_vm13, %v3594_v42, %v1408_v47  ;;  %2642 = vrcp.f32 %v3638_v17  ;;  %v2298_v35 = vmul.f32 -1.442695, %v3641_v45 }
  0xf2   :  { %v1886_v26 = vsub.f32 1.0, %v1885_v22  ;;  %v2639_v40 = vpop.eup %2638  ;;  %v1177_v16 = vsel %vm3609_vm4, %v1176_v59, %v1172_v9  ;;  %vm3694_vm0 = vcmp.eq.f32.partialorder %v1893_v46, 8.507059e+37  ;;  %vm1890_vm1 = vweird.f32 %v3634_v14  ;;  %v492_v46 = vpop.f32.mrf.mxu3 }
  0xf3   :  { %v2641_v6 = vpop.eup %2640  ;;  %v1652_v38 = vsel %vm3681_vm14, %v3607_v61, %v1648_v2  ;;  %v1180_v3 = vmul.f32 %v2639_v40, %v3613_v1  ;;  %vm3700_vm2 = vcmp.eq.f32.partialorder %v1188_v52, 8.507059e+37  ;;  %v1191_v41 = vor.u32 1.1754944e-38, %v1190_v37  ;;  %vm3723_vm4 = vmor %vm1889_vm12, %vm1890_vm1  ;;  %v3758_v1 = vld [vmem:[%s4952_s2] ss:$0 sm:$0xff] }
  0xf4   :  { %v1887_v10 = vmul.f32 %v3634_v14, %v1886_v26  ;;  %2644 = vrcp.f32 %v3662_v23  ;;  %v1417_v32 = vsel %vm3623_vm7, %v1416_v0, %v1412_v58  ;;  %v1428_v53 = vand.u32 2147483647, %v3638_v17  ;;  %v374_v26 = vpop.f32.mrf.mxu0 }
  0xf5   :  { %v1181_v56 = vsub.f32 1.0, %v1180_v3  ;;  %v2068_v55 = vmul.f32 %v1177_v16, %v3493_v8  ;;  %v1657_v59 = vsel %vm3629_vm8, %v1656_v31, %v1652_v38  ;;  %vm1185_vm3 = vweird.f32 %v2639_v40  ;;  %v414_v3 = vpop.f32.mrf.mxu1 }
  0xf6   :  { %v1888_v44 = vadd.f32 %v3634_v14, %v1887_v10  ;;  %v3712_v29 = vadd.f32 1.0, %v2641_v6  ;;  %v1430_v61 = vand.u32 2147483648, %v3638_v17  ;;  %2646 = vpow2.f32 %v2298_v35  ;;  %vm1186_vm7 = vmor %vm1184_vm15, %vm1185_vm3 }
  0xf7   :  { %v1182_v36 = vmul.f32 %v2639_v40, %v1181_v56  ;;  %v2314_v18 = vmul.f32 -1.442695, %v3672_v27  ;;  %v2643_v63 = vpop.eup %2642  ;;  %v3717_v0 = vmul.f32 %v1417_v32, %v3496_v25  ;;  %vm1424_vm5 = vweird.f32 %v3638_v17 }
  0xf8   :  { %v1668_v30 = vand.u32 2147483647, %v3662_v23  ;;  %2648 = vrcp.f32 %v3712_v29  ;;  %v1892_v4 = vsel %vm3723_vm4, %v3634_v14, %v1888_v44  ;;  %v1420_v51 = vmul.f32 %v2643_v63, %v3638_v17 }
  0xf9   :  { %v1183_v25 = vadd.f32 %v2639_v40, %v1182_v36  ;;  %vm3734_vm6 = vcmp.eq.f32.partialorder %v1428_v53, 8.507059e+37  ;;  %v3739_v33 = vmul.f32 %v1657_v59, %v3514_v49  ;;  %vm1664_vm8 = vweird.f32 %v3662_v23 }
  0xfa   :  { %v2645_v57 = vpop.eup %2644  ;;  %v1670_v11 = vand.u32 2147483648, %v3662_v23  ;;  %2650 = vpow2.f32 %v2314_v18  ;;  %v1421_v50 = vsub.f32 1.0, %v1420_v51  ;;  %v1431_v54 = vor.u32 1.1754944e-38, %v1430_v61 }
  0xfb   :  { %v1187_v31 = vsel %vm1186_vm7, %v2639_v40, %v1183_v25  ;;  %v1660_v12 = vmul.f32 %v2645_v57, %v3662_v23  ;;  %v1897_v13 = vsel %vm3694_vm0, %v1896_v20, %v1892_v4  ;;  %vm3751_vm9 = vcmp.eq.f32.partialorder %v1668_v30, 8.507059e+37  ;;  %v454_v30 = vpop.f32.mrf.mxu2  ;;  %v494_v25 = vpop.f32.mrf.mxu3 }
  0xfc   :  { %v1192_v49 = vsel %vm3700_vm2, %v1191_v41, %v1187_v31  ;;  %v754_v14 = vmul.f32 %v3758_v1, %v452_v39  ;;  %v2647_v47 = vpop.eup %2646  ;;  %v1422_v21 = vmul.f32 %v2643_v63, %v1421_v50  ;;  %vm1425_vm10 = vweird.f32 %v2643_v63 }
  0xfd   :  { %v2069_v60 = vmul.f32 %v1192_v49, %v3536_v7  ;;  %v1661_v22 = vsub.f32 1.0, %v1660_v12  ;;  %vm1665_vm11 = vweird.f32 %v2645_v57  ;;  %v1671_v52 = vor.u32 1.1754944e-38, %v1670_v11  ;;  %vm1426_vm12 = vmor %vm1424_vm5, %vm1425_vm10  ;;  %v377_v11 = vpop.f32.mrf.mxu0 }
  0xfe   :  { %v2649_v9 = vpop.eup %2648  ;;  %v3762_v37 = vadd.f32 1.0, %v2647_v47  ;;  %v3770_v2 = vadd.f32 %v3767_v24, %v754_v14  ;;  %v1423_v7 = vadd.f32 %v2643_v63, %v1422_v21  ;;  %v3774_v35 = vmul.f32 %v1897_v13, %v3533_v62  ;;  %vm1666_vm13 = vmor %vm1664_vm8, %vm1665_vm11 }
  0xff   :  { %v2369_v20 = vpack.c.bf16 %v2069_v60, %v2068_v55  ;;  %v1662_v40 = vmul.f32 %v2645_v57, %v1661_v22  ;;  %v1900_v58 = vmul.f32 %v2649_v9, %v3712_v29  ;;  %v1908_v6 = vand.u32 2147483647, %v3712_v29  ;;  %v417_v60 = vpop.f32.mrf.mxu1 }
 0x100   :  { %v2651_v15 = vpop.eup %2650  ;;  %v1910_v16 = vand.u32 2147483648, %v3712_v29  ;;  %2652 = vrcp.f32 %v3762_v37  ;;  %v1427_v38 = vsel %vm1426_vm12, %v2643_v63, %v1423_v7  ;;  %v770_v62 = vmul.f32 %v3758_v1, %v492_v46 }
 0x101   :  { %2517 = vst [vmem:[%s4954_s4 + $0x10] sm:$0xff] %v2369_v20   ;;  %v1663_v10 = vadd.f32 %v2645_v57, %v1662_v40  ;;  %v1901_v42 = vsub.f32 1.0, %v1900_v58  ;;  %v1432_v17 = vsel %vm3734_vm6, %v1431_v54, %v1427_v38  ;;  %v3791_v43 = vadd.f32 1.0, %v2651_v15 }
 0x102   :  { %v2330_v41 = vmul.f32 -1.442695, %v3770_v2  ;;  %v723_v32 = vmul.f32 %v3758_v1, %v374_v26  ;;  %v2085_v44 = vmul.f32 %v1432_v17, %v3553_v48  ;;  %vm1905_vm14 = vweird.f32 %v2649_v9 }
 0x103   :  { %v1667_v56 = vsel %vm1666_vm13, %v2645_v57, %v1663_v10  ;;  %v1902_v53 = vmul.f32 %v2649_v9, %v1901_v42  ;;  %vm1904_vm15 = vweird.f32 %v3712_v29  ;;  %vm3799_vm0 = vcmp.eq.f32.partialorder %v1908_v6, 8.507059e+37 }
 0x104   :  { %v1672_v55 = vsel %vm3751_vm9, %v1671_v52, %v1667_v56  ;;  %2654 = vrcp.f32 %v3791_v43  ;;  %v2409_v23 = vpack.c.bf16 %v2085_v44, %v3717_v0  ;;  %v739_v48 = vmul.f32 %v3758_v1, %v414_v3  ;;  %vm1906_vm1 = vmor %vm1904_vm15, %vm1905_vm14 }
 0x105   :  { %v2101_v36 = vmul.f32 %v1672_v55, %v3560_v19  ;;  %v1903_v61 = vadd.f32 %v2649_v9, %v1902_v53  ;;  %v1911_v63 = vor.u32 1.1754944e-38, %v1910_v16  ;;  %2656 = vpow2.f32 %v2330_v41 }
 0x106   :  { %v3807_v18 = vpop.eup %2652  ;;  %v3810_v29 = vadd.f32 %v3767_v24, %v770_v62  ;;  %v3813_v8 = vadd.f32 %v3767_v24, %v723_v32  ;;  %2525 = vst [vmem:[%s4954_s4 + $0x50] sm:$0xff] %v2409_v23   ;;  %vm1199_vm2 = vweird.f32 %v3762_v37  ;;  %v1203_v5 = vand.u32 2147483647, %v3762_v37 }
 0x107   :  { %v2449_v19 = vpack.c.bf16 %v2101_v36, %v3739_v33  ;;  %v1907_v0 = vsel %vm1906_vm1, %v2649_v9, %v1903_v61  ;;  %v1195_v4 = vmul.f32 %v3807_v18, %v3762_v37  ;;  %v3832_v50 = vadd.f32 %v3767_v24, %v739_v48 }
 0x108   :  { %v1912_v51 = vsel %vm3799_vm0, %v1911_v63, %v1907_v0  ;;  %v2346_v39 = vmul.f32 -1.442695, %v3810_v29  ;;  %v2299_v57 = vmul.f32 -1.442695, %v3813_v8  ;;  %v755_v54 = vmul.f32 %v3758_v1, %v454_v30 }
 0x109   :  { %2533 = vst [vmem:[%s4954_s4 + $0x90] sm:$0xff] %v2449_v19   ;;  %v2117_v33 = vmul.f32 %v1912_v51, %v3586_v28  ;;  %v1196_v31 = vsub.f32 1.0, %v1195_v4  ;;  %v1205_v13 = vand.u32 2147483648, %v3762_v37  ;;  %vm1439_vm3 = vweird.f32 %v3791_v43 }
 0x10a   :  { %v2655_v12 = vpop.eup %2654  ;;  %2658 = vpow2.f32 %v2346_v39  ;;  %v771_v49 = vmul.f32 %v3758_v1, %v494_v25  ;;  %v724_v47 = vmul.f32 %v3758_v1, %v377_v11  ;;  %v2315_v22 = vmul.f32 -1.442695, %v3832_v50  ;;  %v497_v11 = vpop.f32.mrf.mxu3 }
 0x10b   :  { %v2489_v34 = vpack.c.bf16 %v2117_v33, %v3774_v35  ;;  %v1197_v14 = vmul.f32 %v3807_v18, %v1196_v31  ;;  %v1435_v28 = vmul.f32 %v2655_v12, %v3791_v43  ;;  %v2657_v21 = vpop.eup %2656  ;;  %2660 = vpow2.f32 %v2299_v57 }
 0x10c   :  { %v3844_v46 = vadd.f32 %v3767_v24, %v755_v54  ;;  %v3847_v9 = vadd.f32 %v3767_v24, %v771_v49  ;;  %vm1200_vm4 = vweird.f32 %v3807_v18  ;;  %v3854_v20 = vadd.f32 1.0, %v2657_v21 }
 0x10d   :  { %2541 = vst [vmem:[%s4954_s4 + $0xd0] sm:$0xff] %v2489_v34   ;;  %v1198_v52 = vadd.f32 %v3807_v18, %v1197_v14  ;;  %v1436_v26 = vsub.f32 1.0, %v1435_v28  ;;  %2662 = vpow2.f32 %v2315_v22  ;;  %v740_v58 = vmul.f32 %v3758_v1, %v417_v60  ;;  %vm3863_vm6 = vmor %vm1199_vm2, %vm1200_vm4 }
 0x10e   :  { %v2331_v7 = vmul.f32 -1.442695, %v3844_v46  ;;  %v2347_v40 = vmul.f32 -1.442695, %v3847_v9  ;;  %vm1440_vm5 = vweird.f32 %v2655_v12  ;;  %v1445_v35 = vand.u32 2147483648, %v3791_v43 }
 0x10f   :  { %v1437_v15 = vmul.f32 %v2655_v12, %v1436_v26  ;;  %2664 = vrcp.f32 %v3854_v20  ;;  %v1443_v38 = vand.u32 2147483647, %v3791_v43  ;;  %v3869_v10 = vadd.f32 %v3767_v24, %v724_v47  ;;  %vm1441_vm8 = vmor %vm1439_vm3, %vm1440_vm5 }
 0x110   :  { %v2659_v6 = vpop.eup %2658  ;;  %2666 = vpow2.f32 %v2331_v7  ;;  %v1202_v42 = vsel %vm3863_vm6, %v3807_v18, %v1198_v52  ;;  %vm1204_vm7 = vcmp.eq.f32.partialorder %v1203_v5, 8.507059e+37  ;;  %v1206_v37 = vor.u32 1.1754944e-38, %v1205_v13 }
 0x111   :  { %v1438_v62 = vadd.f32 %v2655_v12, %v1437_v15  ;;  %v3874_v3 = vadd.f32 1.0, %v2659_v6  ;;  %2668 = vpow2.f32 %v2347_v40  ;;  %v2661_v17 = vpop.eup %2660  ;;  %v3880_v41 = vadd.f32 %v3767_v24, %v740_v58 }
 0x112   :  { %v1446_v44 = vor.u32 1.1754944e-38, %v1445_v35  ;;  %v1685_v56 = vand.u32 2147483648, %v3854_v20  ;;  %v1207_v55 = vsel %vm1204_vm7, %v1206_v37, %v1202_v42  ;;  %vm1444_vm9 = vcmp.eq.f32.partialorder %v1443_v38, 8.507059e+37 }
 0x113   :  { %v1442_v32 = vsel %vm1441_vm8, %v2655_v12, %v1438_v62  ;;  %2670 = vrcp.f32 %v3874_v3  ;;  %v2663_v53 = vpop.eup %2662  ;;  %v3884_v59 = vadd.f32 1.0, %v2661_v17  ;;  %v2300_v23 = vmul.f32 -1.442695, %v3869_v10 }
 0x114   :  { %v1447_v43 = vsel %vm1444_vm9, %v1446_v44, %v1442_v32  ;;  %v1683_v61 = vand.u32 2147483647, %v3854_v20  ;;  %v3890_v48 = vadd.f32 1.0, %v2663_v53  ;;  %vm1679_vm10 = vweird.f32 %v3854_v20 }
 0x115   :  { %v3887_v36 = vpop.eup %2664  ;;  %2672 = vrcp.f32 %v3884_v59  ;;  %v2316_v30 = vmul.f32 -1.442695, %v3880_v41  ;;  %v3898_v0 = vmul.f32 %v1207_v55, %v3641_v45  ;;  %v1686_v4 = vor.u32 1.1754944e-38, %v1685_v56 }
 0x116   :  { %v2667_v18 = vpop.eup %2666  ;;  %v1675_v63 = vmul.f32 %v3887_v36, %v3854_v20  ;;  %v1925_v25 = vand.u32 2147483648, %v3874_v3  ;;  %2674 = vrcp.f32 %v3890_v48  ;;  %v3903_v51 = vmul.f32 %v1447_v43, %v3672_v27 }
 0x117   :  { %v2669_v19 = vpop.eup %2668  ;;  %v1923_v39 = vand.u32 2147483647, %v3874_v3  ;;  %2676 = vpow2.f32 %v2300_v23  ;;  %vm3908_vm11 = vcmp.eq.f32.partialorder %v1683_v61, 8.507059e+37  ;;  %vm1919_vm12 = vweird.f32 %v3874_v3 }
 0x118   :  { %v1676_v5 = vsub.f32 1.0, %v1675_v63  ;;  %v1218_v45 = vand.u32 2147483647, %v3884_v59  ;;  %v1220_v33 = vand.u32 2147483648, %v3884_v59  ;;  %v3915_v31 = vadd.f32 1.0, %v2667_v18 }
 0x119   :  { %v3906_v57 = vpop.eup %2670  ;;  %v3917_v27 = vadd.f32 1.0, %v2669_v19  ;;  %vm1680_vm13 = vweird.f32 %v3887_v36  ;;  %2678 = vpow2.f32 %v2316_v30  ;;  %v1926_v13 = vor.u32 1.1754944e-38, %v1925_v25  ;;  %v457_v19 = vpop.f32.mrf.mxu2 }
 0x11a   :  { %v1677_v54 = vmul.f32 %v3887_v36, %v1676_v5  ;;  %v1915_v12 = vmul.f32 %v3906_v57, %v3874_v3  ;;  %v1458_v49 = vand.u32 2147483647, %v3890_v48  ;;  %v1460_v34 = vand.u32 2147483648, %v3890_v48  ;;  %vm3943_vm2 = vmor %vm1679_vm10, %vm1680_vm13 }
 0x11b   :  { %2680 = vrcp.f32 %v3915_v31  ;;  %v2673_v14 = vpop.eup %2672  ;;  %vm1214_vm14 = vweird.f32 %v3884_v59  ;;  %vm3929_vm15 = vcmp.eq.f32.partialorder %v1923_v39, 8.507059e+37  ;;  %vm3934_vm0 = vcmp.eq.f32.partialorder %v1218_v45, 8.507059e+37 }
 0x11c   :  { %v1678_v28 = vadd.f32 %v3887_v36, %v1677_v54  ;;  %v1916_v47 = vsub.f32 1.0, %v1915_v12  ;;  %2682 = vrcp.f32 %v3917_v27  ;;  %v2675_v60 = vpop.eup %2674  ;;  %v1210_v22 = vmul.f32 %v2673_v14, %v3884_v59 }
 0x11d   :  { %v1221_v26 = vor.u32 1.1754944e-38, %v1220_v33  ;;  %vm1454_vm1 = vweird.f32 %v3890_v48  ;;  %v2677_v7 = vpop.eup %2676  ;;  %vm1920_vm3 = vweird.f32 %v3906_v57  ;;  %v1450_v15 = vmul.f32 %v2675_v60, %v3890_v48  ;;  %v379_v48 = vpop.f32.mrf.mxu0 }
 0x11e   :  { %v1917_v58 = vmul.f32 %v3906_v57, %v1916_v47  ;;  %v1698_v35 = vand.u32 2147483647, %v3915_v31  ;;  %v1682_v6 = vsel %vm3943_vm2, %v3887_v36, %v1678_v28  ;;  %v1211_v16 = vsub.f32 1.0, %v1210_v22  ;;  %vm3970_vm8 = vmor %vm1919_vm12, %vm1920_vm3 }
 0x11f   :  { %vm3954_vm4 = vcmp.eq.f32.partialorder %v1458_v49, 8.507059e+37  ;;  %v1461_v20 = vor.u32 1.1754944e-38, %v1460_v34  ;;  %v2679_v42 = vpop.eup %2678  ;;  %v1451_v17 = vsub.f32 1.0, %v1450_v15  ;;  %vm1694_vm5 = vweird.f32 %v3915_v31 }
 0x120   :  { %v1918_v62 = vadd.f32 %v3906_v57, %v1917_v58  ;;  %v1700_v37 = vand.u32 2147483648, %v3915_v31  ;;  %v1212_v44 = vmul.f32 %v2673_v14, %v1211_v16  ;;  %vm1215_vm6 = vweird.f32 %v2673_v14 }
 0x121   :  { %v2681_v32 = vpop.eup %2680  ;;  %vm1934_vm7 = vweird.f32 %v3917_v27  ;;  %v3962_v56 = vadd.f32 1.0, %v2677_v7  ;;  %v1687_v55 = vsel %vm3908_vm11, %v1686_v4, %v1682_v6  ;;  %v1452_v36 = vmul.f32 %v2675_v60, %v1451_v17  ;;  %vm1216_vm11 = vmor %vm1214_vm14, %vm1215_vm6  ;;  %v459_v38 = vpop.f32.mrf.mxu2 }
 0x122   :  { %v2683_v53 = vpop.eup %2682  ;;  %vm1455_vm9 = vweird.f32 %v2675_v60  ;;  %v1690_v43 = vmul.f32 %v2681_v32, %v3915_v31  ;;  %vm3975_vm10 = vcmp.eq.f32.partialorder %v1698_v35, 8.507059e+37  ;;  %v1922_v18 = vsel %vm3970_vm8, %v3906_v57, %v1918_v62 }
 0x123   :  { %v1213_v63 = vadd.f32 %v2673_v14, %v1212_v44  ;;  %v1930_v30 = vmul.f32 %v2683_v53, %v3917_v27  ;;  %v1938_v3 = vand.u32 2147483647, %v3917_v27  ;;  %v1453_v4 = vadd.f32 %v2675_v60, %v1452_v36  ;;  %vm1456_vm12 = vmor %vm1454_vm1, %vm1455_vm9 }
 0x124   :  { %v1691_v25 = vsub.f32 1.0, %v1690_v43  ;;  %v1940_v5 = vand.u32 2147483648, %v3917_v27  ;;  %v3988_v39 = vadd.f32 1.0, %v2679_v42  ;;  %vm1695_vm13 = vweird.f32 %v2681_v32 }
 0x125   :  { %v1217_v45 = vsel %vm1216_vm11, %v2673_v14, %v1213_v63  ;;  %v1931_v57 = vsub.f32 1.0, %v1930_v30  ;;  %2684 = vrcp.f32 %v3962_v56  ;;  %v1927_v59 = vsel %vm3929_vm15, %v1926_v13, %v1922_v18  ;;  %v419_v13 = vpop.f32.mrf.mxu1  ;;  %vm1696_vm15 = vmor %vm1694_vm5, %vm1695_vm13  ;;  %v382_v30 = vpop.f32.mrf.mxu0 }
 0x126   :  { %v1222_v33 = vsel %vm3934_vm0, %v1221_v26, %v1217_v45  ;;  %v1457_v54 = vsel %vm1456_vm12, %v2675_v60, %v1453_v4  ;;  %v1692_v12 = vmul.f32 %v2681_v32, %v1691_v25  ;;  %vm1935_vm14 = vweird.f32 %v2683_v53 }
 0x127   :  { %v2071_v49 = vmul.f32 %v1222_v33, %v3813_v8  ;;  %v1462_v34 = vsel %vm3954_vm4, %v1461_v20, %v1457_v54  ;;  %v1932_v14 = vmul.f32 %v2683_v53, %v1931_v57  ;;  %v1701_v22 = vor.u32 1.1754944e-38, %v1700_v37  ;;  %vm1936_vm1 = vmor %vm1934_vm7, %vm1935_vm14  ;;  %v499_v37 = vpop.f32.mrf.mxu3 }
 0x128   :  { %v2087_v28 = vmul.f32 %v1462_v34, %v3832_v50  ;;  %v1693_v47 = vadd.f32 %v2681_v32, %v1692_v12  ;;  %2686 = vrcp.f32 %v3988_v39  ;;  %v2102_v21 = vmul.f32 %v1687_v55, %v3770_v2 }
 0x129   :  { %v2374_v60 = vpack.c.bf16 %v2071_v49, %v3898_v0  ;;  %v1933_v8 = vadd.f32 %v2683_v53, %v1932_v14  ;;  %vm1939_vm0 = vcmp.eq.f32.partialorder %v1938_v3, 8.507059e+37  ;;  %v2118_v52 = vmul.f32 %v1927_v59, %v3810_v29 }
 0x12a   :  { %v2414_v26 = vpack.c.bf16 %v2087_v28, %v3903_v51  ;;  %v1697_v50 = vsel %vm1696_vm15, %v2681_v32, %v1693_v47  ;;  %v1941_v7 = vor.u32 1.1754944e-38, %v1940_v5  ;;  %vm1229_vm2 = vweird.f32 %v3962_v56 }
 0x12b   :  { %v4013_v40 = vpop.eup %2684  ;;  %2518 = vst [vmem:[%s4954_s4 + $0x18] sm:$0xff] %v2374_v60   ;;  %v1702_v2 = vsel %vm3975_vm10, %v1701_v22, %v1697_v50  ;;  %v1937_v0 = vsel %vm1936_vm1, %v2683_v53, %v1933_v8  ;;  %v756_v29 = vmul.f32 %v3758_v1, %v457_v19  ;;  %v772_v51 = vmul.f32 %v3758_v1, %v497_v11 }
 0x12c   :  { %2526 = vst [vmem:[%s4954_s4 + $0x58] sm:$0xff] %v2414_v26   ;;  %v2103_v31 = vmul.f32 %v1702_v2, %v3844_v46  ;;  %v1942_v27 = vsel %vm1939_vm0, %v1941_v7, %v1937_v0  ;;  %v1225_v58 = vmul.f32 %v4013_v40, %v3962_v56  ;;  %v1233_v15 = vand.u32 2147483647, %v3962_v56 }
 0x12d   :  { %v2119_v35 = vmul.f32 %v1942_v27, %v3847_v9  ;;  %v1235_v6 = vand.u32 2147483648, %v3962_v56  ;;  %vm1469_vm3 = vweird.f32 %v3988_v39  ;;  %v4034_v16 = vadd.f32 %v3767_v24, %v756_v29  ;;  %v422_v4 = vpop.f32.mrf.mxu1  ;;  %v462_v56 = vpop.f32.mrf.mxu2 }
 0x12e   :  { %v4036_v20 = vpop.eup %2686  ;;  %v2454_v42 = vpack.c.bf16 %v2103_v31, %v2102_v21  ;;  %v1226_v46 = vsub.f32 1.0, %v1225_v58  ;;  %v4039_v62 = vadd.f32 %v3767_v24, %v772_v51  ;;  %v725_v17 = vmul.f32 %v3758_v1, %v379_v48 }
 0x12f   :  { %v2494_v32 = vpack.c.bf16 %v2119_v35, %v2118_v52  ;;  %v1465_v9 = vmul.f32 %v4036_v20, %v3988_v39  ;;  %v1475_v44 = vand.u32 2147483648, %v3988_v39  ;;  %v2332_v53 = vmul.f32 -1.442695, %v4034_v16  ;;  %v502_v0 = vpop.f32.mrf.mxu3 }
 0x130   :  { %2534 = vst [vmem:[%s4954_s4 + $0x98] sm:$0xff] %v2454_v42   ;;  %v1227_v55 = vmul.f32 %v4013_v40, %v1226_v46  ;;  %v2348_v23 = vmul.f32 -1.442695, %v4039_v62  ;;  %v4052_v36 = vadd.f32 %v3767_v24, %v725_v17  ;;  %v741_v43 = vmul.f32 %v3758_v1, %v419_v13 }
 0x131   :  { %2542 = vst [vmem:[%s4954_s4 + $0xd8] sm:$0xff] %v2494_v32   ;;  %v1466_v61 = vsub.f32 1.0, %v1465_v9  ;;  %2688 = vpow2.f32 %v2332_v53  ;;  %v757_v18 = vmul.f32 %v3758_v1, %v459_v38  ;;  %v773_v63 = vmul.f32 %v3758_v1, %v499_v37 }
 0x132   :  { %vm1230_vm4 = vweird.f32 %v4013_v40  ;;  %2690 = vpow2.f32 %v2348_v23  ;;  %v2301_v3 = vmul.f32 -1.442695, %v4052_v36  ;;  %v4063_v19 = vadd.f32 %v3767_v24, %v741_v43 }
 0x133   :  { %v1228_v25 = vadd.f32 %v4013_v40, %v1227_v55  ;;  %v1467_v5 = vmul.f32 %v4036_v20, %v1466_v61  ;;  %v4068_v11 = vadd.f32 %v3767_v24, %v757_v18  ;;  %v4071_v45 = vadd.f32 %v3767_v24, %v773_v63  ;;  %vm4084_vm6 = vmor %vm1229_vm2, %vm1230_vm4 }
 0x134   :  { %vm1470_vm5 = vweird.f32 %v4036_v20  ;;  %2692 = vpow2.f32 %v2301_v3  ;;  %v2317_v57 = vmul.f32 -1.442695, %v4063_v19  ;;  %v726_v59 = vmul.f32 %v3758_v1, %v382_v30 }
 0x135   :  { %v1468_v33 = vadd.f32 %v4036_v20, %v1467_v5  ;;  %v2333_v54 = vmul.f32 -1.442695, %v4068_v11  ;;  %v2349_v12 = vmul.f32 -1.442695, %v4071_v45  ;;  %v742_v49 = vmul.f32 %v3758_v1, %v422_v4  ;;  %vm4094_vm7 = vmor %vm1469_vm3, %vm1470_vm5 }
 0x136   :  { %v1473_v14 = vand.u32 2147483647, %v3988_v39  ;;  %2694 = vpow2.f32 %v2317_v57  ;;  %v1232_v28 = vsel %vm4084_vm6, %v4013_v40, %v1228_v25  ;;  %v1236_v47 = vor.u32 1.1754944e-38, %v1235_v6 }
 0x137   :  { %v2689_v48 = vpop.eup %2688  ;;  %2696 = vpow2.f32 %v2333_v54  ;;  %v1472_v21 = vsel %vm4094_vm7, %v4036_v20, %v1468_v33  ;;  %v4104_v8 = vadd.f32 %v3767_v24, %v726_v59  ;;  %vm1234_vm8 = vcmp.eq.f32.partialorder %v1233_v15, 8.507059e+37 }
 0x138   :  { %v2691_v13 = vpop.eup %2690  ;;  %v4101_v60 = vadd.f32 1.0, %v2689_v48  ;;  %2698 = vpow2.f32 %v2349_v12  ;;  %v1476_v52 = vor.u32 1.1754944e-38, %v1475_v44  ;;  %v4109_v26 = vadd.f32 %v3767_v24, %v742_v49 }
 0x139   :  { %v4106_v39 = vadd.f32 1.0, %v2691_v13  ;;  %v1237_v7 = vsel %vm1234_vm8, %v1236_v47, %v1232_v28  ;;  %vm1474_vm9 = vcmp.eq.f32.partialorder %v1473_v14, 8.507059e+37  ;;  %v758_v40 = vmul.f32 %v3758_v1, %v462_v56 }
 0x13a   :  { %v2693_v50 = vpop.eup %2692  ;;  %2700 = vrcp.f32 %v4101_v60  ;;  %v1477_v2 = vsel %vm1474_vm9, %v1476_v52, %v1472_v21  ;;  %v2302_v31 = vmul.f32 -1.442695, %v4104_v8  ;;  %v4118_v58 = vmul.f32 %v1237_v7, %v3869_v10 }
 0x13b   :  { %2702 = vrcp.f32 %v4106_v39  ;;  %v4114_v51 = vadd.f32 1.0, %v2693_v50  ;;  %v2318_v35 = vmul.f32 -1.442695, %v4109_v26  ;;  %v4124_v38 = vmul.f32 %v1477_v2, %v3880_v41 }
 0x13c   :  { %v2695_v29 = vpop.eup %2694  ;;  %v4128_v20 = vadd.f32 %v3767_v24, %v758_v40  ;;  %v4131_v42 = vmul.f32 %v3758_v1, %v502_v0  ;;  %v1713_v46 = vand.u32 2147483647, %v4101_v60  ;;  %v1715_v10 = vand.u32 2147483648, %v4101_v60 }
 0x13d   :  { %v2697_v27 = vpop.eup %2696  ;;  %v4120_v15 = vadd.f32 1.0, %v2695_v29  ;;  %2704 = vrcp.f32 %v4114_v51  ;;  %v1955_v17 = vand.u32 2147483648, %v4106_v39  ;;  %vm1709_vm10 = vweird.f32 %v4101_v60 }
 0x13e   :  { %v2699_v6 = vpop.eup %2698  ;;  %v1250_v41 = vand.u32 2147483648, %v4114_v51  ;;  %v4141_v32 = vadd.f32 1.0, %v2697_v27  ;;  %v1953_v55 = vand.u32 2147483647, %v4106_v39  ;;  %v1248_v23 = vand.u32 2147483647, %v4114_v51 }
 0x13f   :  { %2706 = vrcp.f32 %v4120_v15  ;;  %v4143_v9 = vadd.f32 1.0, %v2699_v6  ;;  %vm1949_vm11 = vweird.f32 %v4106_v39  ;;  %v1488_v61 = vand.u32 2147483647, %v4120_v15 }
 0x140   :  { %v4137_v37 = vpop.eup %2700  ;;  %2708 = vpow2.f32 %v2302_v31  ;;  %v1490_v18 = vand.u32 2147483648, %v4120_v15  ;;  %v1716_v30 = vor.u32 1.1754944e-38, %v1715_v10  ;;  %v4157_v3 = vor.u32 1.1754944e-38, %v1955_v17 }
 0x141   :  { %v4145_v44 = vpop.eup %2702  ;;  %v1705_v53 = vmul.f32 %v4137_v37, %v4101_v60  ;;  %2710 = vpow2.f32 %v2318_v35  ;;  %vm4160_vm12 = vcmp.eq.f32.partialorder %v1713_v46, 8.507059e+37  ;;  %vm1244_vm13 = vweird.f32 %v4114_v51 }
 0x142   :  { %v1945_v43 = vmul.f32 %v4145_v44, %v4106_v39  ;;  %2712 = vrcp.f32 %v4141_v32  ;;  %v1251_v57 = vor.u32 1.1754944e-38, %v1250_v41  ;;  %vm1484_vm14 = vweird.f32 %v4120_v15 }
 0x143   :  { %v1706_v63 = vsub.f32 1.0, %v1705_v53  ;;  %2714 = vrcp.f32 %v4143_v9  ;;  %v2705_v4 = vpop.eup %2704  ;;  %vm1710_vm15 = vweird.f32 %v4137_v37  ;;  %vm4169_vm0 = vcmp.eq.f32.partialorder %v1248_v23, 8.507059e+37 }
 0x144   :  { %v1946_v5 = vsub.f32 1.0, %v1945_v43  ;;  %v1240_v54 = vmul.f32 %v2705_v4, %v4114_v51  ;;  %v1728_v49 = vand.u32 2147483647, %v4141_v32  ;;  %vm1950_vm1 = vweird.f32 %v4145_v44  ;;  %vm4196_vm7 = vmor %vm1709_vm10, %vm1710_vm15 }
 0x145   :  { %v2707_v59 = vpop.eup %2706  ;;  %v1707_v33 = vmul.f32 %v4137_v37, %v1706_v63  ;;  %vm4176_vm2 = vcmp.eq.f32.partialorder %v1953_v55, 8.507059e+37  ;;  %vm4181_vm3 = vcmp.eq.f32.partialorder %v1488_v61, 8.507059e+37  ;;  %v1491_v22 = vor.u32 1.1754944e-38, %v1490_v18  ;;  %vm4215_vm10 = vmor %vm1949_vm11, %vm1950_vm1  ;;  %v384_v18 = vpop.f32.mrf.mxu0 }
 0x146   :  { %v2709_v34 = vpop.eup %2708  ;;  %v1947_v14 = vmul.f32 %v4145_v44, %v1946_v5  ;;  %v1480_v28 = vmul.f32 %v2707_v59, %v4120_v15  ;;  %v1241_v21 = vsub.f32 1.0, %v1240_v54  ;;  %vm1724_vm4 = vweird.f32 %v4141_v32 }
 0x147   :  { %v2711_v56 = vpop.eup %2710  ;;  %v1708_v13 = vadd.f32 %v4137_v37, %v1707_v33  ;;  %v1730_v52 = vand.u32 2147483648, %v4141_v32  ;;  %v1968_v50 = vand.u32 2147483647, %v4143_v9  ;;  %vm1245_vm5 = vweird.f32 %v2705_v4 }
 0x148   :  { %v2713_v7 = vpop.eup %2712  ;;  %v1948_v40 = vadd.f32 %v4145_v44, %v1947_v14  ;;  %v1481_v2 = vsub.f32 1.0, %v1480_v28  ;;  %vm1964_vm6 = vweird.f32 %v4143_v9  ;;  %v1970_v0 = vand.u32 2147483648, %v4143_v9  ;;  %vm1246_vm15 = vmor %vm1244_vm13, %vm1245_vm5 }
 0x149   :  { %v2715_v29 = vpop.eup %2714  ;;  %v1242_v27 = vmul.f32 %v2705_v4, %v1241_v21  ;;  %v1720_v35 = vmul.f32 %v2713_v7, %v4141_v32  ;;  %vm4201_vm8 = vcmp.eq.f32.partialorder %v1728_v49, 8.507059e+37  ;;  %v4205_v46 = vadd.f32 1.0, %v2709_v34  ;;  %v424_v49 = vpop.f32.mrf.mxu1 }
 0x14a   :  { %v1712_v10 = vsel %vm4196_vm7, %v4137_v37, %v1708_v13  ;;  %v1482_v17 = vmul.f32 %v2707_v59, %v1481_v2  ;;  %vm1485_vm9 = vweird.f32 %v2707_v59  ;;  %v1960_v60 = vmul.f32 %v2715_v29, %v4143_v9  ;;  %v504_v21 = vpop.f32.mrf.mxu3 }
 0x14b   :  { %v1243_v53 = vadd.f32 %v2705_v4, %v1242_v27  ;;  %v1721_v55 = vsub.f32 1.0, %v1720_v35  ;;  %v1731_v23 = vor.u32 1.1754944e-38, %v1730_v52  ;;  %v4219_v43 = vadd.f32 1.0, %v2711_v56  ;;  %vm1486_vm11 = vmor %vm1484_vm14, %vm1485_vm9  ;;  %v464_v56 = vpop.f32.mrf.mxu2 }
 0x14c   :  { %v1952_v37 = vsel %vm4215_vm10, %v4145_v44, %v1948_v40  ;;  %v1483_v61 = vadd.f32 %v2707_v59, %v1482_v17  ;;  %vm1725_vm7 = vweird.f32 %v2713_v7  ;;  %v1961_v39 = vsub.f32 1.0, %v1960_v60 }
 0x14d   :  { %v1717_v63 = vsel %vm4160_vm12, %v1716_v30, %v1712_v10  ;;  %v1247_v5 = vsel %vm1246_vm15, %v2705_v4, %v1243_v53  ;;  %v1722_v33 = vmul.f32 %v2713_v7, %v1721_v55  ;;  %2716 = vrcp.f32 %v4205_v46  ;;  %vm1726_vm12 = vmor %vm1724_vm4, %vm1725_vm7  ;;  %v387_v2 = vpop.f32.mrf.mxu0 }
 0x14e   :  { %v1252_v44 = vsel %vm4169_vm0, %v1251_v57, %v1247_v5  ;;  %v1487_v51 = vsel %vm1486_vm11, %v2707_v59, %v1483_v61  ;;  %v1962_v54 = vmul.f32 %v2715_v29, %v1961_v39  ;;  %vm1965_vm13 = vweird.f32 %v2715_v29 }
 0x14f   :  { %v1957_v25 = vsel %vm4176_vm2, %v4157_v3, %v1952_v37  ;;  %v2073_v30 = vmul.f32 %v1252_v44, %v4052_v36  ;;  %v1492_v15 = vsel %vm4181_vm3, %v1491_v22, %v1487_v51  ;;  %v1723_v4 = vadd.f32 %v2713_v7, %v1722_v33  ;;  %vm1966_vm0 = vmor %vm1964_vm6, %vm1965_vm13 }
 0x150   :  { %v2089_v34 = vmul.f32 %v1492_v15, %v4063_v19  ;;  %v1963_v57 = vadd.f32 %v2715_v29, %v1962_v54  ;;  %vm1969_vm14 = vcmp.eq.f32.partialorder %v1968_v50, 8.507059e+37  ;;  %2718 = vrcp.f32 %v4219_v43 }
 0x151   :  { %v2104_v59 = vmul.f32 %v1717_v63, %v4034_v16  ;;  %v2379_v3 = vpack.c.bf16 %v2073_v30, %v4118_v58  ;;  %v1727_v12 = vsel %vm1726_vm12, %v2713_v7, %v1723_v4  ;;  %v1971_v36 = vor.u32 1.1754944e-38, %v1970_v0  ;;  %v427_v10 = vpop.f32.mrf.mxu1 }
 0x152   :  { %v2120_v14 = vmul.f32 %v1957_v25, %v4039_v62  ;;  %v2419_v19 = vpack.c.bf16 %v2089_v34, %v4124_v38  ;;  %v1732_v32 = vsel %vm4201_vm8, %v1731_v23, %v1727_v12  ;;  %v1967_v48 = vsel %vm1966_vm0, %v2715_v29, %v1963_v57 }
 0x153   :  { %v4254_v28 = vpop.eup %2716  ;;  %2519 = vst [vmem:[%s4954_s4 + $0x20] sm:$0xff] %v2379_v3   ;;  %v2105_v16 = vmul.f32 %v1732_v32, %v4068_v11  ;;  %v1972_v58 = vsel %vm1969_vm14, %v1971_v36, %v1967_v48  ;;  %vm1259_vm1 = vweird.f32 %v4205_v46  ;;  %v2334_v9 = vmul.f32 -1.442695, %v4128_v20 }
 0x154   :  { %2527 = vst [vmem:[%s4954_s4 + $0x60] sm:$0xff] %v2419_v19   ;;  %v2121_v62 = vmul.f32 %v1972_v58, %v4071_v45  ;;  %v1255_v38 = vmul.f32 %v4254_v28, %v4205_v46  ;;  %v1263_v47 = vand.u32 2147483647, %v4205_v46  ;;  %v1265_v22 = vand.u32 2147483648, %v4205_v46 }
 0x155   :  { %v2459_v11 = vpack.c.bf16 %v2105_v16, %v2104_v59  ;;  %vm1499_vm2 = vweird.f32 %v4219_v43  ;;  %2720 = vpow2.f32 %v2334_v9  ;;  %v4273_v13 = vadd.f32 %v3767_v24, %v4131_v42  ;;  %v467_v9 = vpop.f32.mrf.mxu2 }
 0x156   :  { %v2719_v52 = vpop.eup %2718  ;;  %v2499_v50 = vpack.c.bf16 %v2121_v62, %v2120_v14  ;;  %v1256_v45 = vsub.f32 1.0, %v1255_v38  ;;  %v727_v7 = vmul.f32 %v3758_v1, %v384_v18  ;;  %v743_v40 = vmul.f32 %v3758_v1, %v424_v49 }
 0x157   :  { %2535 = vst [vmem:[%s4954_s4 + $0xa0] sm:$0xff] %v2459_v11   ;;  %vm1260_vm3 = vweird.f32 %v4254_v28  ;;  %v1495_v0 = vmul.f32 %v2719_v52, %v4219_v43  ;;  %v2350_v42 = vmul.f32 -1.442695, %v4273_v13  ;;  %v759_v29 = vmul.f32 %v3758_v1, %v464_v56 }
 0x158   :  { %2543 = vst [vmem:[%s4954_s4 + $0xe0] sm:$0xff] %v2499_v50   ;;  %v1257_v31 = vmul.f32 %v4254_v28, %v1256_v45  ;;  %v4289_v27 = vadd.f32 %v3767_v24, %v727_v7  ;;  %v4292_v35 = vadd.f32 %v3767_v24, %v743_v40  ;;  %v775_v6 = vmul.f32 %v3758_v1, %v504_v21  ;;  %vm4317_vm5 = vmor %vm1259_vm1, %vm1260_vm3  ;;  %v4369_v7 = vld [vmem:[%s4952_s2] ss:$0 sm:$0xff] }
 0x159   :  { %v1496_v17 = vsub.f32 1.0, %v1495_v0  ;;  %2722 = vpow2.f32 %v2350_v42  ;;  %v4296_v60 = vadd.f32 %v3767_v24, %v759_v29  ;;  %v728_v41 = vmul.f32 %v3758_v1, %v387_v2 }
 0x15a   :  { %v1258_v53 = vadd.f32 %v4254_v28, %v1257_v31  ;;  %v2303_v55 = vmul.f32 -1.442695, %v4289_v27  ;;  %v2319_v23 = vmul.f32 -1.442695, %v4292_v35  ;;  %v4303_v37 = vadd.f32 %v3767_v24, %v775_v6 }
 0x15b   :  { %v2721_v61 = vpop.eup %2720  ;;  %v1497_v39 = vmul.f32 %v2719_v52, %v1496_v17  ;;  %v2335_v18 = vmul.f32 -1.442695, %v4296_v60  ;;  %v4307_v63 = vadd.f32 %v3767_v24, %v728_v41  ;;  %v744_v5 = vmul.f32 %v3758_v1, %v427_v10 }
 0x15c   :  { %vm1500_vm4 = vweird.f32 %v2719_v52  ;;  %v4310_v33 = vadd.f32 1.0, %v2721_v61  ;;  %2724 = vpow2.f32 %v2303_v55  ;;  %v2351_v44 = vmul.f32 -1.442695, %v4303_v37 }
 0x15d   :  { %v1498_v54 = vadd.f32 %v2719_v52, %v1497_v39  ;;  %v1505_v49 = vand.u32 2147483648, %v4219_v43  ;;  %2726 = vpow2.f32 %v2319_v23  ;;  %v1262_v1 = vsel %vm4317_vm5, %v4254_v28, %v1258_v53  ;;  %vm4329_vm6 = vmor %vm1499_vm2, %vm1500_vm4 }
 0x15e   :  { %v1503_v25 = vand.u32 2147483647, %v4219_v43  ;;  %2728 = vrcp.f32 %v4310_v33  ;;  %v1266_v15 = vor.u32 1.1754944e-38, %v1265_v22  ;;  %v2304_v4 = vmul.f32 -1.442695, %v4307_v63  ;;  %v507_v22 = vpop.f32.mrf.mxu3 }
 0x15f   :  { %v2723_v30 = vpop.eup %2722  ;;  %2730 = vpow2.f32 %v2335_v18  ;;  %v4335_v34 = vadd.f32 %v3767_v24, %v744_v5  ;;  %vm1264_vm8 = vcmp.eq.f32.partialorder %v1263_v47, 8.507059e+37  ;;  %v1502_v57 = vsel %vm4329_vm6, %v2719_v52, %v1498_v54  ;;  %v389_v52 = vpop.f32.mrf.mxu0 }
 0x160   :  { %v4339_v59 = vadd.f32 1.0, %v2723_v30  ;;  %2732 = vpow2.f32 %v2351_v44  ;;  %v1267_v3 = vsel %vm1264_vm8, %v1266_v15, %v1262_v1  ;;  %v1506_v12 = vor.u32 1.1754944e-38, %v1505_v49 }
 0x161   :  { %vm1504_vm9 = vcmp.eq.f32.partialorder %v1503_v25, 8.507059e+37  ;;  %v1745_v36 = vand.u32 2147483648, %v4310_v33  ;;  %v2320_v24 = vmul.f32 -1.442695, %v4335_v34  ;;  %v4349_v28 = vmul.f32 %v1267_v3, %v4104_v8 }
 0x162   :  { %v2725_v43 = vpop.eup %2724  ;;  %2734 = vrcp.f32 %v4339_v59  ;;  %v1507_v19 = vsel %vm1504_vm9, %v1506_v12, %v1502_v57  ;;  %v1985_v16 = vand.u32 2147483648, %v4339_v59  ;;  %vm1739_vm10 = vweird.f32 %v4310_v33 }
 0x163   :  { %v2727_v14 = vpop.eup %2726  ;;  %v4343_v32 = vadd.f32 1.0, %v2725_v43  ;;  %2736 = vpow2.f32 %v2304_v4  ;;  %v1743_v47 = vand.u32 2147483647, %v4310_v33  ;;  %v4360_v8 = vmul.f32 %v1507_v19, %v4109_v26 }
 0x164   :  { %v4346_v48 = vpop.eup %2728  ;;  %v4352_v58 = vadd.f32 1.0, %v2727_v14  ;;  %v1746_v11 = vor.u32 1.1754944e-38, %v1745_v36  ;;  %v1983_v21 = vand.u32 2147483647, %v4339_v59  ;;  %v4372_v40 = vmul.f32 %v4369_v7, %v467_v9 }
 0x165   :  { %v2731_v62 = vpop.eup %2730  ;;  %v1735_v38 = vmul.f32 %v4346_v48, %v4310_v33  ;;  %2738 = vrcp.f32 %v4343_v32  ;;  %v4376_v2 = vor.u32 1.1754944e-38, %v1985_v16  ;;  %v1278_v0 = vand.u32 2147483647, %v4343_v32 }
 0x166   :  { %v2733_v56 = vpop.eup %2732  ;;  %2740 = vrcp.f32 %v4352_v58  ;;  %v4364_v45 = vadd.f32 1.0, %v2731_v62  ;;  %v4382_v29 = vmul.f32 %v4369_v7, %v507_v22  ;;  %vm4385_vm15 = vcmp.eq.f32.partialorder %v1743_v47, 8.507059e+37  ;;  %v509_v46 = vpop.f32.mrf.mxu3 }
 0x167   :  { %v1736_v50 = vsub.f32 1.0, %v1735_v38  ;;  %2742 = vpow2.f32 %v2320_v24  ;;  %v4379_v42 = vadd.f32 1.0, %v2733_v56  ;;  %vm1979_vm7 = vweird.f32 %v4339_v59 }
 0x168   :  { %v4374_v26 = vpop.eup %2734  ;;  %v1280_v41 = vand.u32 2147483648, %v4343_v32  ;;  %v4394_v53 = vmul.f32 %v4369_v7, %v389_v52  ;;  %vm1740_vm11 = vweird.f32 %v4346_v48  ;;  %v1518_v55 = vand.u32 2147483647, %v4352_v58 }
 0x169   :  { %v2737_v31 = vpop.eup %2736  ;;  %v1737_v6 = vmul.f32 %v4346_v48, %v1736_v50  ;;  %v1975_v17 = vmul.f32 %v4374_v26, %v4339_v59  ;;  %v1520_v23 = vand.u32 2147483648, %v4352_v58  ;;  %2744 = vrcp.f32 %v4364_v45  ;;  %vm4418_vm0 = vmor %vm1739_vm10, %vm1740_vm11 }
 0x16a   :  { %vm1274_vm13 = vweird.f32 %v4343_v32  ;;  %2746 = vrcp.f32 %v4379_v42  ;;  %vm4404_vm12 = vcmp.eq.f32.partialorder %v1278_v0, 8.507059e+37  ;;  %vm1514_vm14 = vweird.f32 %v4352_v58 }
 0x16b   :  { %v2739_v61 = vpop.eup %2738  ;;  %v1738_v39 = vadd.f32 %v4346_v48, %v1737_v6  ;;  %v1976_v18 = vsub.f32 1.0, %v1975_v17  ;;  %v4409_v54 = vadd.f32 1.0, %v2737_v31  ;;  %v1281_v25 = vor.u32 1.1754944e-38, %v1280_v41 }
 0x16c   :  { %v2741_v5 = vpop.eup %2740  ;;  %v1270_v44 = vmul.f32 %v2739_v61, %v4343_v32  ;;  %v1758_v15 = vand.u32 2147483647, %v4364_v45  ;;  %vm1980_vm1 = vweird.f32 %v4374_v26  ;;  %vm4423_vm2 = vcmp.eq.f32.partialorder %v1518_v55, 8.507059e+37 }
 0x16d   :  { %v2743_v49 = vpop.eup %2742  ;;  %v1977_v1 = vmul.f32 %v4374_v26, %v1976_v18  ;;  %v1510_v30 = vmul.f32 %v2741_v5, %v4352_v58  ;;  %v1521_v3 = vor.u32 1.1754944e-38, %v1520_v23  ;;  %v1742_v12 = vsel %vm4418_vm0, %v4346_v48, %v1738_v39  ;;  %vm4449_vm9 = vmor %vm1979_vm7, %vm1980_vm1 }
 0x16e   :  { %v1271_v4 = vsub.f32 1.0, %v1270_v44  ;;  %vm4430_vm3 = vcmp.eq.f32.partialorder %v1983_v21, 8.507059e+37  ;;  %vm1754_vm4 = vweird.f32 %v4364_v45  ;;  %v1760_v36 = vand.u32 2147483648, %v4364_v45 }
 0x16f   :  { %v1511_v33 = vsub.f32 1.0, %v1510_v30  ;;  %v2745_v14 = vpop.eup %2744  ;;  %v1978_v19 = vadd.f32 %v4374_v26, %v1977_v1  ;;  %vm1275_vm5 = vweird.f32 %v2739_v61  ;;  %2748 = vrcp.f32 %v4409_v54 }
 0x170   :  { %v1272_v24 = vmul.f32 %v2739_v61, %v1271_v4  ;;  %v2747_v16 = vpop.eup %2746  ;;  %vm1515_vm6 = vweird.f32 %v2741_v5  ;;  %v1750_v48 = vmul.f32 %v2745_v14, %v4364_v45  ;;  %vm4439_vm8 = vcmp.eq.f32.partialorder %v1758_v15, 8.507059e+37  ;;  %vm1276_vm11 = vmor %vm1274_vm13, %vm1275_vm5 }
 0x171   :  { %v1512_v9 = vmul.f32 %v2741_v5, %v1511_v33  ;;  %v1747_v38 = vsel %vm4385_vm15, %v1746_v11, %v1742_v12  ;;  %v1990_v56 = vmul.f32 %v2747_v16, %v4379_v42  ;;  %vm1994_vm10 = vweird.f32 %v4379_v42  ;;  %vm1516_vm15 = vmor %vm1514_vm14, %vm1515_vm6 }
 0x172   :  { %v1273_v22 = vadd.f32 %v2739_v61, %v1272_v24  ;;  %v1751_v52 = vsub.f32 1.0, %v1750_v48  ;;  %v1998_v11 = vand.u32 2147483647, %v4379_v42  ;;  %v2000_v50 = vand.u32 2147483648, %v4379_v42 }
 0x173   :  { %v1513_v21 = vadd.f32 %v2741_v5, %v1512_v9  ;;  %v1982_v59 = vsel %vm4449_vm9, %v4374_v26, %v1978_v19  ;;  %vm1755_vm7 = vweird.f32 %v2745_v14  ;;  %v1991_v31 = vsub.f32 1.0, %v1990_v56 }
 0x174   :  { %v1277_v0 = vsel %vm1276_vm11, %v2739_v61, %v1273_v22  ;;  %v1752_v10 = vmul.f32 %v2745_v14, %v1751_v52  ;;  %v4467_v17 = vadd.f32 1.0, %v2743_v49  ;;  %vm1995_vm13 = vweird.f32 %v2747_v16 }
 0x175   :  { %v1282_v32 = vsel %vm4404_vm12, %v1281_v25, %v1277_v0  ;;  %v1517_v6 = vsel %vm1516_vm15, %v2741_v5, %v1513_v21  ;;  %v4469_v41 = vpop.eup %2748  ;;  %v1992_v23 = vmul.f32 %v2747_v16, %v1991_v31  ;;  %v1761_v39 = vor.u32 1.1754944e-38, %v1760_v36  ;;  %v429_v5 = vpop.f32.mrf.mxu1  ;;  %vm1756_vm12 = vmor %vm1754_vm4, %vm1755_vm7 }
 0x176   :  { %v2075_v55 = vmul.f32 %v1282_v32, %v4289_v27  ;;  %v1522_v26 = vsel %vm4423_vm2, %v1521_v3, %v1517_v6  ;;  %v1753_v61 = vadd.f32 %v2745_v14, %v1752_v10  ;;  %v1285_v18 = vmul.f32 %v4469_v41, %v4409_v54  ;;  %vm1996_vm14 = vmor %vm1994_vm10, %vm1995_vm13 }
 0x177   :  { %v2091_v58 = vmul.f32 %v1522_v26, %v4292_v35  ;;  %v1987_v44 = vsel %vm4430_vm3, %v4376_v2, %v1982_v59  ;;  %v1993_v27 = vadd.f32 %v2747_v16, %v1992_v23  ;;  %2750 = vrcp.f32 %v4467_v17  ;;  %v469_v35 = vpop.f32.mrf.mxu2 }
 0x178   :  { %v2384_v51 = vpack.c.bf16 %v2075_v55, %v4349_v28  ;;  %v1757_v1 = vsel %vm1756_vm12, %v2745_v14, %v1753_v61  ;;  %v2001_v25 = vor.u32 1.1754944e-38, %v2000_v50  ;;  %v1286_v30 = vsub.f32 1.0, %v1285_v18 }
 0x179   :  { %v2424_v49 = vpack.c.bf16 %v2091_v58, %v4360_v8  ;;  %v2106_v2 = vmul.f32 %v1747_v38, %v4128_v20  ;;  %v1762_v28 = vsel %vm4439_vm8, %v1761_v39, %v1757_v1  ;;  %v1997_v45 = vsel %vm1996_vm14, %v2747_v16, %v1993_v27  ;;  %v4502_v20 = vld [vmem:[%s4953_s3] ss:$0 sm:$0xff]  ;;  %v512_v58 = vpop.f32.mrf.mxu3 }
 0x17a   :  { %2520 = vst [vmem:[%s4954_s4 + $0x28] sm:$0xff] %v2384_v51   ;;  %vm1999_vm0 = vcmp.eq.f32.partialorder %v1998_v11, 8.507059e+37  ;;  %v2107_v8 = vmul.f32 %v1762_v28, %v4296_v60  ;;  %vm1289_vm1 = vweird.f32 %v4409_v54  ;;  %v4506_v15 = vadd.f32 %v4502_v20, %v4372_v40 }
 0x17b   :  { %2528 = vst [vmem:[%s4954_s4 + $0x68] sm:$0xff] %v2424_v49   ;;  %v2002_v42 = vsel %vm1999_vm0, %v2001_v25, %v1997_v45  ;;  %v2122_v4 = vmul.f32 %v1987_v44, %v4273_v13  ;;  %v1287_v3 = vmul.f32 %v4469_v41, %v1286_v30  ;;  %v4513_v60 = vadd.f32 %v4502_v20, %v4382_v29 }
 0x17c   :  { %v2123_v57 = vmul.f32 %v2002_v42, %v4303_v37  ;;  %v2464_v12 = vpack.c.bf16 %v2107_v8, %v2106_v2  ;;  %v1293_v43 = vand.u32 2147483647, %v4409_v54  ;;  %v2336_v33 = vmul.f32 -1.442695, %v4506_v15 }
 0x17d   :  { %v4519_v40 = vadd.f32 %v4502_v20, %v4394_v53  ;;  %v2751_v36 = vpop.eup %2750  ;;  %v2352_v13 = vmul.f32 -1.442695, %v4513_v60  ;;  %v745_v37 = vmul.f32 %v4369_v7, %v429_v5  ;;  %v761_v19 = vmul.f32 %v4369_v7, %v469_v35  ;;  %v392_v53 = vpop.f32.mrf.mxu0 }
 0x17e   :  { %v2504_v14 = vpack.c.bf16 %v2123_v57, %v2122_v4  ;;  %2536 = vst [vmem:[%s4954_s4 + $0xa8] sm:$0xff] %v2464_v12   ;;  %vm1290_vm2 = vweird.f32 %v4469_v41  ;;  %v1295_v29 = vand.u32 2147483648, %v4409_v54  ;;  %v1525_v24 = vmul.f32 %v2751_v36, %v4467_v17  ;;  %v432_v22 = vpop.f32.mrf.mxu1 }
 0x17f   :  { %2752 = vpow2.f32 %v2336_v33  ;;  %v1288_v16 = vadd.f32 %v4469_v41, %v1287_v3  ;;  %v2305_v9 = vmul.f32 -1.442695, %v4519_v40  ;;  %v4536_v48 = vadd.f32 %v4502_v20, %v745_v37  ;;  %v472_v11 = vpop.f32.mrf.mxu2  ;;  %vm4550_vm4 = vmor %vm1289_vm1, %vm1290_vm2 }
 0x180   :  { %2544 = vst [vmem:[%s4954_s4 + $0xe8] sm:$0xff] %v2504_v14   ;;  %2754 = vpow2.f32 %v2352_v13  ;;  %v1526_v62 = vsub.f32 1.0, %v1525_v24  ;;  %vm1529_vm3 = vweird.f32 %v4467_v17  ;;  %v4540_v38 = vadd.f32 %v4502_v20, %v761_v19 }
 0x181   :  { %v777_v47 = vmul.f32 %v4369_v7, %v509_v46  ;;  %v1535_v56 = vand.u32 2147483648, %v4467_v17  ;;  %2756 = vpow2.f32 %v2305_v9  ;;  %v2321_v21 = vmul.f32 -1.442695, %v4536_v48 }
 0x182   :  { %v730_v52 = vmul.f32 %v4369_v7, %v392_v53  ;;  %v1527_v59 = vmul.f32 %v2751_v36, %v1526_v62  ;;  %vm1530_vm5 = vweird.f32 %v2751_v36  ;;  %v2337_v0 = vmul.f32 -1.442695, %v4540_v38 }
 0x183   :  { %v4556_v31 = vadd.f32 %v4502_v20, %v777_v47  ;;  %v1292_v32 = vsel %vm4550_vm4, %v4469_v41, %v1288_v16  ;;  %v1533_v6 = vand.u32 2147483647, %v4467_v17  ;;  %2758 = vpow2.f32 %v2321_v21  ;;  %vm4568_vm8 = vmor %vm1529_vm3, %vm1530_vm5 }
 0x184   :  { %v746_v54 = vmul.f32 %v4369_v7, %v432_v22  ;;  %v1528_v55 = vadd.f32 %v2751_v36, %v1527_v59  ;;  %2760 = vpow2.f32 %v2337_v0  ;;  %v762_v23 = vmul.f32 %v4369_v7, %v472_v11 }
 0x185   :  { %v2753_v10 = vpop.eup %2752  ;;  %v2353_v26 = vmul.f32 -1.442695, %v4556_v31  ;;  %vm1294_vm6 = vcmp.eq.f32.partialorder %v1293_v43, 8.507059e+37  ;;  %v1296_v39 = vor.u32 1.1754944e-38, %v1295_v29  ;;  %v4575_v5 = vadd.f32 %v4502_v20, %v730_v52 }
 0x186   :  { %v2755_v61 = vpop.eup %2754  ;;  %v4572_v18 = vadd.f32 1.0, %v2753_v10  ;;  %v1532_v44 = vsel %vm4568_vm8, %v2751_v36, %v1528_v55  ;;  %v1536_v51 = vor.u32 1.1754944e-38, %v1535_v56  ;;  %v4583_v17 = vadd.f32 %v4502_v20, %v746_v54 }
 0x187   :  { %v4579_v27 = vadd.f32 1.0, %v2755_v61  ;;  %2762 = vpow2.f32 %v2353_v26  ;;  %v2757_v35 = vpop.eup %2756  ;;  %v1297_v49 = vsel %vm1294_vm6, %v1296_v39, %v1292_v32  ;;  %v778_v1 = vmul.f32 %v4369_v7, %v512_v58 }
 0x188   :  { %2764 = vrcp.f32 %v4572_v18  ;;  %vm1534_vm9 = vcmp.eq.f32.partialorder %v1533_v6, 8.507059e+37  ;;  %v4588_v25 = vadd.f32 %v4502_v20, %v762_v23  ;;  %v4590_v28 = vadd.f32 1.0, %v2757_v35 }
 0x189   :  { %2766 = vrcp.f32 %v4579_v27  ;;  %v2759_v30 = vpop.eup %2758  ;;  %v1537_v2 = vsel %vm1534_vm9, %v1536_v51, %v1532_v44  ;;  %v2306_v45 = vmul.f32 -1.442695, %v4575_v5  ;;  %v4594_v42 = vmul.f32 %v1297_v49, %v4307_v63 }
 0x18a   :  { %v2761_v8 = vpop.eup %2760  ;;  %v1775_v46 = vand.u32 2147483648, %v4572_v18  ;;  %v4597_v4 = vadd.f32 1.0, %v2759_v30  ;;  %v2015_v57 = vand.u32 2147483648, %v4579_v27  ;;  %2768 = vrcp.f32 %v4590_v28 }
 0x18b   :  { %v2322_v3 = vmul.f32 -1.442695, %v4583_v17  ;;  %v4603_v12 = vadd.f32 %v4502_v20, %v778_v1  ;;  %v4606_v33 = vmul.f32 %v1537_v2, %v4335_v34  ;;  %v1773_v63 = vand.u32 2147483647, %v4572_v18 }
 0x18c   :  { %2770 = vrcp.f32 %v4597_v4  ;;  %v4611_v36 = vmul.f32 -1.442695, %v4588_v25  ;;  %v2013_v13 = vand.u32 2147483647, %v4579_v27  ;;  %v4616_v37 = vadd.f32 1.0, %v2761_v8 }
 0x18d   :  { %v2763_v43 = vpop.eup %2762  ;;  %2772 = vpow2.f32 %v2306_v45  ;;  %vm1769_vm10 = vweird.f32 %v4572_v18  ;;  %v4625_v24 = vor.u32 1.1754944e-38, %v1775_v46  ;;  %v1308_v53 = vand.u32 2147483647, %v4590_v28 }
 0x18e   :  { %v4613_v14 = vpop.eup %2764  ;;  %v4618_v19 = vadd.f32 1.0, %v2763_v43  ;;  %v1310_v16 = vand.u32 2147483648, %v4590_v28  ;;  %vm2009_vm11 = vweird.f32 %v4579_v27  ;;  %v4632_v62 = vor.u32 1.1754944e-38, %v2015_v57 }
 0x18f   :  { %v4620_v29 = vpop.eup %2766  ;;  %v1765_v34 = vmul.f32 %v4613_v14, %v4572_v18  ;;  %v1548_v47 = vand.u32 2147483647, %v4597_v4  ;;  %v4636_v22 = vmul.f32 -1.442695, %v4603_v12  ;;  %vm1304_vm15 = vweird.f32 %v4590_v28 }
 0x190   :  { %v2005_v9 = vmul.f32 %v4620_v29, %v4579_v27  ;;  %v1550_v21 = vand.u32 2147483648, %v4597_v4  ;;  %2774 = vrcp.f32 %v4616_v37  ;;  %v2769_v52 = vpop.eup %2768  ;;  %vm1770_vm7 = vweird.f32 %v4613_v14 }
 0x191   :  { %v1766_v56 = vsub.f32 1.0, %v1765_v34  ;;  %vm1544_vm13 = vweird.f32 %v4597_v4  ;;  %2776 = vrcp.f32 %v4618_v19  ;;  %v1300_v0 = vmul.f32 %v2769_v52, %v4590_v28  ;;  %vm4676_vm5 = vmor %vm1769_vm10, %vm1770_vm7 }
 0x192   :  { %v2006_v11 = vsub.f32 1.0, %v2005_v9  ;;  %v2771_v50 = vpop.eup %2770  ;;  %vm4646_vm12 = vcmp.eq.f32.partialorder %v1308_v53, 8.507059e+37  ;;  %v1311_v6 = vor.u32 1.1754944e-38, %v1310_v16  ;;  %vm2010_vm14 = vweird.f32 %v4620_v29 }
 0x193   :  { %v1767_v59 = vmul.f32 %v4613_v14, %v1766_v56  ;;  %v2773_v54 = vpop.eup %2772  ;;  %v1540_v55 = vmul.f32 %v2771_v50, %v4597_v4  ;;  %vm4653_vm0 = vcmp.eq.f32.partialorder %v1548_v47, 8.507059e+37  ;;  %v1301_v23 = vsub.f32 1.0, %v1300_v0  ;;  %vm4686_vm9 = vmor %vm2009_vm11, %vm2010_vm14 }
 0x194   :  { %v2007_v10 = vmul.f32 %v4620_v29, %v2006_v11  ;;  %v1551_v58 = vor.u32 1.1754944e-38, %v1550_v21  ;;  %v1788_v61 = vand.u32 2147483647, %v4616_v37  ;;  %v1790_v39 = vand.u32 2147483648, %v4616_v37 }
 0x195   :  { %v1768_v41 = vadd.f32 %v4613_v14, %v1767_v59  ;;  %vm4660_vm1 = vcmp.eq.f32.partialorder %v1773_v63, 8.507059e+37  ;;  %vm4664_vm2 = vcmp.eq.f32.partialorder %v2013_v13, 8.507059e+37  ;;  %v1541_v35 = vsub.f32 1.0, %v1540_v55 }
 0x196   :  { %2778 = vpow2.f32 %v2322_v3  ;;  %v2775_v49 = vpop.eup %2774  ;;  %v2008_v1 = vadd.f32 %v4620_v29, %v2007_v10  ;;  %v1302_v30 = vmul.f32 %v2769_v52, %v1301_v23  ;;  %vm1305_vm4 = vweird.f32 %v2769_v52  ;;  %v434_v23 = vpop.f32.mrf.mxu1 }
 0x197   :  { %v4670_v2 = vadd.f32 1.0, %v2773_v54  ;;  %v2777_v45 = vpop.eup %2776  ;;  %v1542_v46 = vmul.f32 %v2771_v50, %v1541_v35  ;;  %vm1545_vm6 = vweird.f32 %v2771_v50  ;;  %v1780_v57 = vmul.f32 %v2775_v49, %v4616_v37  ;;  %vm1306_vm10 = vmor %vm1304_vm15, %vm1305_vm4 }
 0x198   :  { %vm2024_vm8 = vweird.f32 %v4618_v19  ;;  %v1303_v43 = vadd.f32 %v2769_v52, %v1302_v30  ;;  %vm4690_vm3 = vcmp.eq.f32.partialorder %v1788_v61, 8.507059e+37  ;;  %v1791_v63 = vor.u32 1.1754944e-38, %v1790_v39  ;;  %vm1546_vm11 = vmor %vm1544_vm13, %vm1545_vm6 }
 0x199   :  { %v2028_v13 = vand.u32 2147483647, %v4618_v19  ;;  %v1772_v34 = vsel %vm4676_vm5, %v4613_v14, %v1768_v41  ;;  %v1543_v27 = vadd.f32 %v2771_v50, %v1542_v46  ;;  %v1781_v53 = vsub.f32 1.0, %v1780_v57 }
 0x19a   :  { %v2020_v16 = vmul.f32 %v2777_v45, %v4618_v19  ;;  %v2012_v9 = vsel %vm4686_vm9, %v4620_v29, %v2008_v1  ;;  %v1307_v47 = vsel %vm1306_vm10, %v2769_v52, %v1303_v43  ;;  %vm1785_vm7 = vweird.f32 %v2775_v49  ;;  %v514_v1 = vpop.f32.mrf.mxu3 }
 0x19b   :  { %2780 = vrcp.f32 %v4670_v2  ;;  %v1312_v28 = vsel %vm4646_vm12, %v1311_v6, %v1307_v47  ;;  %v1547_v56 = vsel %vm1546_vm11, %v2771_v50, %v1543_v27  ;;  %v1782_v21 = vmul.f32 %v2775_v49, %v1781_v53 }
 0x19c   :  { %v2779_v14 = vpop.eup %2778  ;;  %v2021_v11 = vsub.f32 1.0, %v2020_v16  ;;  %v2077_v59 = vmul.f32 %v1312_v28, %v4519_v40  ;;  %v1552_v29 = vsel %vm4653_vm0, %v1551_v58, %v1547_v56  ;;  %vm2025_vm15 = vweird.f32 %v2777_v45  ;;  %v474_v58 = vpop.f32.mrf.mxu2 }
 0x19d   :  { %v2030_v52 = vand.u32 2147483648, %v4618_v19  ;;  %v2093_v4 = vmul.f32 %v1552_v29, %v4536_v48  ;;  %v1783_v0 = vadd.f32 %v2775_v49, %v1782_v21  ;;  %v4715_v10 = vadd.f32 1.0, %v2779_v14  ;;  %vm2026_vm14 = vmor %vm2024_vm8, %vm2025_vm15 }
 0x19e   :  { %v2022_v54 = vmul.f32 %v2777_v45, %v2021_v11  ;;  %v1777_v50 = vsel %vm4660_vm1, %v4625_v24, %v1772_v34  ;;  %v2017_v40 = vsel %vm4664_vm2, %v4632_v62, %v2012_v9  ;;  %v2389_v32 = vpack.c.bf16 %v2077_v59, %v4594_v42 }
 0x19f   :  { %vm5091_vm13 = vweird.f32 %v4616_v37  ;;  %2782 = vpow2.f32 %v4611_v36  ;;  %v2429_v48 = vpack.c.bf16 %v2093_v4, %v4606_v33  ;;  %v2031_v36 = vor.u32 1.1754944e-38, %v2030_v52  ;;  %v394_v37 = vpop.f32.mrf.mxu0 }
 0x1a0   :  { %vm1786_vm12 = vmor %vm5091_vm13, %vm1785_vm7  ;;  %v2023_v55 = vadd.f32 %v2777_v45, %v2022_v54  ;;  %2784 = vrcp.f32 %v4715_v10  ;;  %2521 = vst [vmem:[%s4954_s4 + $0x30] sm:$0xff] %v2389_v32   ;;  %v2108_v33 = vmul.f32 %v1777_v50, %v4506_v15  ;;  %vm2029_vm0 = vcmp.eq.f32.partialorder %v2028_v13, 8.507059e+37 }
 0x1a1   :  { %v1787_v6 = vsel %vm1786_vm12, %v2775_v49, %v1783_v0  ;;  %v4730_v26 = vpop.eup %2780  ;;  %2529 = vst [vmem:[%s4954_s4 + $0x70] sm:$0xff] %v2429_v48   ;;  %v2124_v61 = vmul.f32 %v2017_v40, %v4513_v60  ;;  %2786 = vpow2.f32 %v4636_v22  ;;  %v731_v44 = vmul.f32 %v4369_v7, %v394_v37 }
 0x1a2   :  { %v1792_v42 = vsel %vm4690_vm3, %v1791_v63, %v1787_v6  ;;  %v2027_v62 = vsel %vm2026_vm14, %v2777_v45, %v2023_v55  ;;  %v1315_v15 = vmul.f32 %v4730_v26, %v4670_v2  ;;  %v763_v35 = vmul.f32 %v4369_v7, %v474_v58 }
 0x1a3   :  { %v2109_v24 = vmul.f32 %v1792_v42, %v4540_v38  ;;  %v2032_v39 = vsel %vm2029_vm0, %v2031_v36, %v2027_v62  ;;  %v747_v38 = vmul.f32 %v4369_v7, %v434_v23  ;;  %v779_v18 = vmul.f32 %v4369_v7, %v514_v1 }
 0x1a4   :  { %v2125_v41 = vmul.f32 %v2032_v39, %v4556_v31  ;;  %v4761_v31 = vadd.f32 %v4502_v20, %v731_v44  ;;  %v4767_v45 = vadd.f32 %v4502_v20, %v763_v35  ;;  %v1316_v8 = vsub.f32 1.0, %v1315_v15 }
 0x1a5   :  { %v2469_v19 = vpack.c.bf16 %v2109_v24, %v2108_v33  ;;  %v2783_v51 = vpop.eup %2782  ;;  %v4764_v30 = vadd.f32 %v4502_v20, %v747_v38  ;;  %v4784_v53 = vadd.f32 %v4502_v20, %v779_v18  ;;  %v1325_v9 = vand.u32 2147483648, %v4670_v2 }
 0x1a6   :  { %v4753_v49 = vpop.eup %2784  ;;  %v2509_v60 = vpack.c.bf16 %v2125_v41, %v2124_v61  ;;  %v4758_v22 = vadd.f32 1.0, %v2783_v51  ;;  %v2307_v3 = vmul.f32 -1.442695, %v4761_v31  ;;  %v2339_v13 = vmul.f32 -1.442695, %v4767_v45 }
 0x1a7   :  { %2537 = vst [vmem:[%s4954_s4 + $0xb0] sm:$0xff] %v2469_v19   ;;  %v2787_v46 = vpop.eup %2786  ;;  %v1555_v57 = vmul.f32 %v4753_v49, %v4715_v10  ;;  %v2323_v43 = vmul.f32 -1.442695, %v4764_v30  ;;  %v1317_v34 = vmul.f32 %v4730_v26, %v1316_v8  ;;  %vm1319_vm1 = vweird.f32 %v4670_v2 }
 0x1a8   :  { %2545 = vst [vmem:[%s4954_s4 + $0xf0] sm:$0xff] %v2509_v60   ;;  %2788 = vrcp.f32 %v4758_v22  ;;  %v4778_v63 = vadd.f32 1.0, %v2787_v46  ;;  %vm1320_vm2 = vweird.f32 %v4730_v26  ;;  %v2355_v14 = vmul.f32 -1.442695, %v4784_v53 }
 0x1a9   :  { %2790 = vpow2.f32 %v2307_v3  ;;  %v1556_v27 = vsub.f32 1.0, %v1555_v57  ;;  %v1318_v47 = vadd.f32 %v4730_v26, %v1317_v34  ;;  %v1323_v11 = vand.u32 2147483647, %v4670_v2  ;;  %vm4801_vm3 = vmor %vm1319_vm1, %vm1320_vm2 }
 0x1aa   :  { %2792 = vrcp.f32 %v4778_v63  ;;  %v1326_v59 = vor.u32 1.1754944e-38, %v1325_v9  ;;  %vm1559_vm4 = vweird.f32 %v4715_v10  ;;  %vm1560_vm5 = vweird.f32 %v4753_v49 }
 0x1ab   :  { %2794 = vpow2.f32 %v2323_v43  ;;  %v1557_v20 = vmul.f32 %v4753_v49, %v1556_v27  ;;  %v1563_v0 = vand.u32 2147483647, %v4715_v10  ;;  %v1565_v54 = vand.u32 2147483648, %v4715_v10  ;;  %vm4832_vm9 = vmor %vm1559_vm4, %vm1560_vm5 }
 0x1ac   :  { %2796 = vpow2.f32 %v2339_v13  ;;  %v1322_v2 = vsel %vm4801_vm3, %v4730_v26, %v1318_v47  ;;  %v1803_v40 = vand.u32 2147483647, %v4758_v22  ;;  %vm1324_vm6 = vcmp.eq.f32.partialorder %v1323_v11, 8.507059e+37 }
 0x1ad   :  { %2798 = vpow2.f32 %v2355_v14  ;;  %v1558_v48 = vadd.f32 %v4753_v49, %v1557_v20  ;;  %v1805_v36 = vand.u32 2147483648, %v4758_v22  ;;  %v1327_v37 = vsel %vm1324_vm6, %v1326_v59, %v1322_v2 }
 0x1ae   :  { %v4786_v16 = vpop.eup %2788  ;;  %vm4823_vm8 = vcmp.eq.f32.partialorder %v1563_v0, 8.507059e+37  ;;  %v1566_v33 = vor.u32 1.1754944e-38, %v1565_v54  ;;  %vm1799_vm10 = vweird.f32 %v4758_v22  ;;  %vm4837_vm11 = vcmp.eq.f32.partialorder %v1803_v40, 8.507059e+37 }
 0x1af   :  { %v1795_v7 = vmul.f32 %v4786_v16, %v4758_v22  ;;  %v2791_v28 = vpop.eup %2790  ;;  %v1562_v61 = vsel %vm4832_vm9, %v4753_v49, %v1558_v48  ;;  %vm1800_vm7 = vweird.f32 %v4786_v16  ;;  %v4849_v41 = vmul.f32 %v1327_v37, %v4575_v5 }
 0x1b0   :  { %v4796_v21 = vpop.eup %2792  ;;  %v4799_v29 = vadd.f32 1.0, %v2791_v28  ;;  %v1806_v15 = vor.u32 1.1754944e-38, %v1805_v36  ;;  %vm2039_vm15 = vweird.f32 %v4778_v63  ;;  %v2043_v38 = vand.u32 2147483647, %v4778_v63  ;;  %vm4862_vm13 = vmor %vm1799_vm10, %vm1800_vm7 }
 0x1b1   :  { %v1796_v56 = vsub.f32 1.0, %v1795_v7  ;;  %v2795_v52 = vpop.eup %2794  ;;  %v2035_v32 = vmul.f32 %v4796_v21, %v4778_v63  ;;  %v2045_v35 = vand.u32 2147483648, %v4778_v63  ;;  %v1567_v60 = vsel %vm4823_vm8, %v1566_v33, %v1562_v61 }
 0x1b2   :  { %v2797_v50 = vpop.eup %2796  ;;  %2800 = vrcp.f32 %v4799_v29  ;;  %v4818_v55 = vadd.f32 1.0, %v2795_v52  ;;  %v1338_v10 = vand.u32 2147483647, %v4799_v29  ;;  %v1340_v44 = vand.u32 2147483648, %v4799_v29 }
 0x1b3   :  { %v1797_v6 = vmul.f32 %v4786_v16, %v1796_v56  ;;  %v4820_v42 = vadd.f32 1.0, %v2797_v50  ;;  %v2799_v24 = vpop.eup %2798  ;;  %v2036_v58 = vsub.f32 1.0, %v2035_v32  ;;  %vm2040_vm12 = vweird.f32 %v4796_v21 }
 0x1b4   :  { %2802 = vrcp.f32 %v4818_v55  ;;  %v4852_v51 = vadd.f32 1.0, %v2799_v24  ;;  %vm1334_vm14 = vweird.f32 %v4799_v29  ;;  %vm4873_vm0 = vcmp.eq.f32.partialorder %v1338_v10, 8.507059e+37  ;;  %vm4902_vm9 = vmor %vm2039_vm15, %vm2040_vm12 }
 0x1b5   :  { %2804 = vrcp.f32 %v4820_v42  ;;  %v1798_v39 = vadd.f32 %v4786_v16, %v1797_v6  ;;  %v2037_v1 = vmul.f32 %v4796_v21, %v2036_v58  ;;  %v1341_v43 = vor.u32 1.1754944e-38, %v1340_v44 }
 0x1b6   :  { %2806 = vrcp.f32 %v4852_v51  ;;  %v1578_v13 = vand.u32 2147483647, %v4818_v55  ;;  %v1580_v34 = vand.u32 2147483648, %v4818_v55  ;;  %vm1574_vm2 = vweird.f32 %v4818_v55 }
 0x1b7   :  { %v1802_v46 = vsel %vm4862_vm13, %v4786_v16, %v1798_v39  ;;  %v2038_v7 = vadd.f32 %v4796_v21, %v2037_v1  ;;  %v1818_v14 = vand.u32 2147483647, %v4820_v42  ;;  %vm4886_vm3 = vcmp.eq.f32.partialorder %v2043_v38, 8.507059e+37 }
 0x1b8   :  { %v2801_v19 = vpop.eup %2800  ;;  %v1807_v9 = vsel %vm4837_vm11, %v1806_v15, %v1802_v46  ;;  %vm1814_vm4 = vweird.f32 %v4820_v42  ;;  %v1820_v11 = vand.u32 2147483648, %v4820_v42  ;;  %vm4894_vm8 = vcmp.eq.f32.partialorder %v1578_v13, 8.507059e+37 }
 0x1b9   :  { %v1330_v49 = vmul.f32 %v2801_v19, %v4799_v29  ;;  %vm1335_vm1 = vweird.f32 %v2801_v19  ;;  %v1581_v0 = vor.u32 1.1754944e-38, %v1580_v34  ;;  %v2042_v40 = vsel %vm4902_vm9, %v4796_v21, %v2038_v7 }
 0x1ba   :  { %v2803_v8 = vpop.eup %2802  ;;  %vm1336_vm5 = vmor %vm1334_vm14, %vm1335_vm1  ;;  %vm4912_vm11 = vcmp.eq.f32.partialorder %v1818_v14, 8.507059e+37  ;;  %v1821_v37 = vor.u32 1.1754944e-38, %v1820_v11  ;;  %v2058_v21 = vand.u32 2147483647, %v4852_v51  ;;  %v2060_v24 = vand.u32 2147483648, %v4852_v51 }
 0x1bb   :  { %v1331_v57 = vsub.f32 1.0, %v1330_v49  ;;  %v2805_v3 = vpop.eup %2804  ;;  %v1570_v18 = vmul.f32 %v2803_v8, %v4818_v55  ;;  %vm1575_vm6 = vweird.f32 %v2803_v8  ;;  %v2094_v58 = vmul.f32 %v1567_v60, %v4583_v17 }
 0x1bc   :  { %v1810_v16 = vmul.f32 %v2805_v3, %v4820_v42  ;;  %v2807_v59 = vpop.eup %2806  ;;  %vm1815_vm10 = vweird.f32 %v2805_v3  ;;  %vm1576_vm7 = vmor %vm1574_vm2, %vm1575_vm6  ;;  %v2046_v61 = vor.u32 1.1754944e-38, %v2045_v35  ;;  %v2110_v10 = vmul.f32 %v1807_v9, %v4588_v25 }
 0x1bd   :  { %v1332_v27 = vmul.f32 %v2801_v19, %v1331_v57  ;;  %v1571_v47 = vsub.f32 1.0, %v1570_v18  ;;  %v2050_v29 = vmul.f32 %v2807_v59, %v4852_v51  ;;  %vm1816_vm15 = vmor %vm1814_vm4, %vm1815_vm10  ;;  %vm2055_vm13 = vweird.f32 %v2807_v59 }
 0x1be   :  { %v1811_v56 = vsub.f32 1.0, %v1810_v16  ;;  %vm2054_vm12 = vweird.f32 %v4852_v51  ;;  %v2047_v17 = vsel %vm4886_vm3, %v2046_v61, %v2042_v40 }
 0x1bf   :  { %v1333_v20 = vadd.f32 %v2801_v19, %v1332_v27  ;;  %v1572_v52 = vmul.f32 %v2803_v8, %v1571_v47  ;;  %v2051_v26 = vsub.f32 1.0, %v2050_v29  ;;  %vm2056_vm14 = vmor %vm2054_vm12, %vm2055_vm13 }
 0x1c0   :  { %v1812_v2 = vmul.f32 %v2805_v3, %v1811_v56 }
 0x1c1   :  { %v1337_v50 = vsel %vm1336_vm5, %v2801_v19, %v1333_v20  ;;  %v1573_v48 = vadd.f32 %v2803_v8, %v1572_v52  ;;  %v2052_v55 = vmul.f32 %v2807_v59, %v2051_v26 }
 0x1c2   :  { %v1342_v32 = vsel %vm4873_vm0, %v1341_v43, %v1337_v50  ;;  %v1813_v36 = vadd.f32 %v2805_v3, %v1812_v2  ;;  %vm2059_vm0 = vcmp.eq.f32.partialorder %v2058_v21, 8.507059e+37 }
 0x1c3   :  { %v2079_v63 = vmul.f32 %v1342_v32, %v4761_v31  ;;  %v1577_v33 = vsel %vm1576_vm7, %v2803_v8, %v1573_v48 }
 0x1c4   :  { %v1582_v31 = vsel %vm4894_vm8, %v1581_v0, %v1577_v33  ;;  %v1817_v23 = vsel %vm1816_vm15, %v2805_v3, %v1813_v36 }
 0x1c5   :  { %v2394_v62 = vpack.c.bf16 %v2079_v63, %v4849_v41  ;;  %v2095_v39 = vmul.f32 %v1582_v31, %v4764_v30  ;;  %v1822_v42 = vsel %vm4912_vm11, %v1821_v37, %v1817_v23  ;;  %v2053_v41 = vadd.f32 %v2807_v59, %v2052_v55 }
 0x1c6   :  { %v2111_v19 = vmul.f32 %v1822_v42, %v4767_v45  ;;  %v2061_v30 = vor.u32 1.1754944e-38, %v2060_v24  ;;  %v2126_v45 = vmul.f32 %v2047_v17, %v4603_v12 }
 0x1c7   :  { %2522 = vst [vmem:[%s4954_s4 + $0x38] sm:$0xff] %v2394_v62   ;;  %v2434_v15 = vpack.c.bf16 %v2095_v39, %v2094_v58  ;;  %v2057_v38 = vsel %vm2056_vm14, %v2807_v59, %v2053_v41 }
 0x1c8   :  { %v2474_v44 = vpack.c.bf16 %v2111_v19, %v2110_v10  ;;  %v2062_v25 = vsel %vm2059_vm0, %v2061_v30, %v2057_v38 }
 0x1c9   :  { %2530 = vst [vmem:[%s4954_s4 + $0x78] sm:$0xff] %v2434_v15   ;;  %v2127_v51 = vmul.f32 %v2062_v25, %v4784_v53 }
 0x1ca   :  { %2538 = vst [vmem:[%s4954_s4 + $0xb8] sm:$0xff] %v2474_v44  }
 0x1cb   :  { %v2514_v35 = vpack.c.bf16 %v2127_v51, %v2126_v45 }
 0x1cd   :  { %2546 = vst [vmem:[%s4954_s4 + $0xf8] sm:$0xff] %v2514_v35  }

</bundles_post_ra>
